<compile_context>
chip_gen: v6e
topology: v6e:2x2x1
jax: 0.10.0
libtpu: 0.0.40
codegen_flags: <defaults>
</compile_context>

<pallas_src>
import jax
import jax.numpy as jnp
from jax import lax
from jax.experimental import pallas as pl
from jax.experimental.pallas import tpu as pltpu

K = 11          # Conv1d kernel size
PAD = 5         # 'same' padding
HALO = 8        # halo kept on each side of an L-tile (>= PAD)
EPS = 1e-5      # BatchNorm eps
_T_ROWS = 256   # x rows transposed per chunk when filling the channel-major tile


def _round_up(v, m):
    return (v + m - 1) // m * m


def _pick_tile(L):
    """L-tile is the lane dim of the output block: multiple of 128 or == L."""
    for tl in (2048, 1024, 512, 256, 128):
        if L % tl == 0:
            return tl
    return L


def _epi_chunk(C_out, TL):
    """Lane-chunk for the epilogue so live f32 values stay ~<= 64KB."""
    ch = max(128, (16384 // max(C_out, 1)) // 128 * 128)
    return min(TL, ch)


def _load_tile_channel_major(x_ref, xt_ref, l, TL):
    """Fill xt_ref (C_in_pad, TL + 2*HALO) with this tile transposed to
    channel-major layout; zero-fill the halo at sequence edges (Conv1d 'same'
    zero padding) and the channel-pad sublanes."""
    CP, W = xt_ref.shape
    C_in = x_ref.shape[2]
    nL = pl.num_programs(1)
    start = l * TL
    if TL % 8 == 0:
        start = pl.multiple_of(start, 8)

    # Zero halos (all rows) and channel-pad rows (all lanes), then overwrite
    # with real neighbour data where it exists.
    xt_ref[:, 0:HALO] = jnp.zeros((CP, HALO), xt_ref.dtype)
    xt_ref[:, HALO + TL:W] = jnp.zeros((CP, HALO), xt_ref.dtype)
    if CP > C_in:
        xt_ref[C_in:CP, :] = jnp.zeros((CP - C_in, W), xt_ref.dtype)

    # Body: (rows, C_in) -> (C_in, rows) transpose in bounded chunks.
    for r0 in range(0, TL, _T_ROWS):
        rl = min(_T_ROWS, TL - r0)
        xt_ref[0:C_in, HALO + r0:HALO + r0 + rl] = \
            x_ref[0, pl.ds(start + r0, rl), :].T

    @pl.when(l > 0)
    def _():
        xt_ref[0:C_in, 0:HALO] = x_ref[0, pl.ds(start - HALO, HALO), :].T

    @pl.when(l < nL - 1)
    def _():
        xt_ref[0:C_in, HALO + TL:W] = x_ref[0, pl.ds(start + TL, HALO), :].T


def _conv_tile(xt_ref, col_ref, wp_ref, acc_ref, TL):
    """acc_ref (C_out, TL) f32 <- conv (no bias) of this tile via ONE MXU dot.

    im2col slab: tap k occupies sublanes [k*CP, (k+1)*CP) of col_ref (channel
    pad rows are zero; the packed weights are zero-padded to match)."""
    CP = xt_ref.shape[0]
    for k in range(K):                      # static unroll, K = 11
        off = k + HALO - PAD                # 3 .. 13 (lane shift into the halo)
        col_ref[k * CP:(k + 1) * CP, :] = xt_ref[:, off:off + TL]
    acc_ref[...] = jnp.dot(wp_ref[...], col_ref[...],
                           preferred_element_type=jnp.float32)


def _stats_kernel(x_ref, wp_ref, stats_ref, xt_ref, col_ref, acc_ref):
    """Pass 1: per-batch-element channel sum / sum-of-squares of the conv output."""
    l = pl.program_id(1)
    C_out, TL = acc_ref.shape

    @pl.when(l == 0)
    def _():
        stats_ref[...] = jnp.zeros_like(stats_ref)

    _load_tile_channel_major(x_ref, xt_ref, l, TL)
    _conv_tile(xt_ref, col_ref, wp_ref, acc_ref, TL)

    ch = _epi_chunk(C_out, TL)
    s1 = jnp.zeros((C_out, 1), jnp.float32)
    s2 = jnp.zeros((C_out, 1), jnp.float32)
    for c0 in range(0, TL, ch):                               # static chunk loop
        cl = min(ch, TL - c0)
        z = acc_ref[:, c0:c0 + cl]                            # (C_out, cl) f32
        s1 = s1 + jnp.sum(z, axis=1, keepdims=True)
        s2 = s2 + jnp.sum(z * z, axis=1, keepdims=True)
    stats_ref[0, :, 0:1] += s1
    stats_ref[0, :, 1:2] += s2


def _apply_kernel(x_ref, wp_ref, scale_ref, shift_ref, o_ref,
                  xt_ref, col_ref, acc_ref):
    """Pass 2: recompute conv tile, fused BN scale/shift + ReLU, lane-dense store
    directly in PyTorch's (B, C_out, L) layout."""
    l = pl.program_id(1)
    C_out, TL = acc_ref.shape

    _load_tile_channel_major(x_ref, xt_ref, l, TL)
    _conv_tile(xt_ref, col_ref, wp_ref, acc_ref, TL)

    s = scale_ref[...]                                        # (C_out, 1) f32
    t = shift_ref[...]                                        # (C_out, 1) f32
    ch = _epi_chunk(C_out, TL)
    for c0 in range(0, TL, ch):                               # static chunk loop
        cl = min(ch, TL - c0)
        z = acc_ref[:, c0:c0 + cl]                            # (C_out, cl) f32
        o_ref[0, :, c0:c0 + cl] = jnp.maximum(z * s + t, 0.0).astype(o_ref.dtype)


def conv_embedding(x, w, b, gamma, beta):
    """x: (B, L, C_in), w: (C_out, C_in, K) [PyTorch Conv1d layout] -> (B, C_out, L)."""
    B, L, C_in = x.shape
    C_out, C_in_w, Kw = w.shape
    assert Kw == K and C_in_w == C_in

    CP = _round_up(C_in, 8)            # tap slot height (sublane aligned)
    TL = _pick_tile(L)
    nL = L // TL

    # Pack weights for the im2col dot: (C_out, C_in, K) -> (C_out, K*CP),
    # tap-major, channel-padded with zeros (tiny weight-only transform).
    wp = jnp.transpose(w, (0, 2, 1))                          # (C_out, K, C_in)
    wp = jnp.pad(wp, ((0, 0), (0, 0), (0, CP - C_in)))
    wp = wp.reshape(C_out, K * CP).astype(x.dtype)

    x_spec = pl.BlockSpec((1, L, C_in), lambda bi, li: (bi, 0, 0))
    w_spec = pl.BlockSpec((C_out, K * CP), lambda bi, li: (0, 0))
    scratch = [pltpu.VMEM((CP, TL + 2 * HALO), x.dtype),      # haloed channel-major tile
               pltpu.VMEM((K * CP, TL), x.dtype),             # im2col slab
               pltpu.VMEM((C_out, TL), jnp.float32)]          # f32 conv output

    # ---- Pass 1: global BatchNorm statistics (sum / sumsq per channel) ----
    stats = pl.pallas_call(
        _stats_kernel,
        out_shape=jax.ShapeDtypeStruct((B, C_out, 2), jnp.float32),
        grid=(B, nL),
        in_specs=[x_spec, w_spec],
        out_specs=pl.BlockSpec((1, C_out, 2), lambda bi, li: (bi, 0, 0)),
        scratch_shapes=scratch,
        compiler_params=pltpu.CompilerParams(
            dimension_semantics=("parallel", "arbitrary"),
            vmem_limit_bytes=64 * 1024 * 1024),
    )(x, wp)

    # Tiny per-channel glue math. The conv bias only shifts the mean, so it
    # cancels exactly under batch-statistic BN (kept in signature for parity).
    n = B * L
    sums = jnp.sum(stats, axis=0)                             # (C_out, 2) f32
    mean_z = sums[:, 0] / n
    var = jnp.maximum(sums[:, 1] / n - mean_z * mean_z, 0.0)  # biased variance
    scale = gamma.astype(jnp.float32) * lax.rsqrt(var + EPS)
    shift = beta.astype(jnp.float32) - mean_z * scale
    del b  # cancels under batch-stat BN

    # ---- Pass 2: conv + fused BN/ReLU, stored directly as (B, C_out, L) ----
    out = pl.pallas_call(
        _apply_kernel,
        out_shape=jax.ShapeDtypeStruct((B, C_out, L), x.dtype),
        grid=(B, nL),
        in_specs=[x_spec, w_spec,
                  pl.BlockSpec((C_out, 1), lambda bi, li: (0, 0)),
                  pl.BlockSpec((C_out, 1), lambda bi, li: (0, 0))],
        out_specs=pl.BlockSpec((1, C_out, TL), lambda bi, li: (bi, 0, li)),
        scratch_shapes=scratch,
        compiler_params=pltpu.CompilerParams(
            dimension_semantics=("parallel", "parallel"),
            vmem_limit_bytes=64 * 1024 * 1024),
    )(x, wp, scale.reshape(C_out, 1), shift.reshape(C_out, 1))
    return out


def reference(x, w, b, gamma, beta):
    """Pure-JAX reference (NCL conv + batch-stat BN + ReLU), PyTorch semantics."""
    x_ncl = jnp.transpose(x, (0, 2, 1))                       # (B, C_in, L)
    y = lax.conv_general_dilated(
        x_ncl, w, window_strides=(1,), padding=[(PAD, PAD)],
        dimension_numbers=("NCH", "OIH", "NCH"))
    y = y + b[None, :, None]
    mean = jnp.mean(y, axis=(0, 2), keepdims=True)
    var = jnp.mean((y - mean) ** 2, axis=(0, 2), keepdims=True)
    y = (y - mean) * lax.rsqrt(var + EPS)
    y = y * gamma[None, :, None] + beta[None, :, None]
    return jnp.maximum(y, 0.0)


if __name__ == "__main__":
    orig_dim, embed_dim = 12, 32
    B, L = 2, 16

    key = jax.random.PRNGKey(0)
    kx, kw, kb, kg, kbeta = jax.random.split(key, 5)
    x = jax.random.normal(kx, (B, L, orig_dim), jnp.float32)
    w = jax.random.normal(kw, (embed_dim, orig_dim, K), jnp.float32) * 0.1
    b = jax.random.normal(kb, (embed_dim,), jnp.float32) * 0.1
    gamma = 1.0 + 0.1 * jax.random.normal(kg, (embed_dim,), jnp.float32)
    beta = 0.1 * jax.random.normal(kbeta, (embed_dim,), jnp.float32)

    out = jax.block_until_ready(jax.jit(conv_embedding)(x, w, b, gamma, beta))
    ref = jax.block_until_ready(reference(x, w, b, gamma, beta))

    assert out.shape == (B, embed_dim, L), out.shape
    err = float(jnp.max(jnp.abs(out - ref)))
    assert jnp.allclose(out, ref, atol=2e-4, rtol=2e-4), err
    print("KERNEL_OK")
</pallas_src>

<mosaic_0001>
module attributes {stable_mosaic.version = 11 : i64} {
  func.func @_stats_kernel(%arg0: i32, %arg1: i32, %arg2: memref<1x16x12xf32, #tpu.memory_space<vmem>>, %arg3: memref<32x176xf32, #tpu.memory_space<vmem>>, %arg4: memref<1x32x2xf32, #tpu.memory_space<vmem>>, %arg5: memref<16x32xf32, #tpu.memory_space<vmem>>, %arg6: memref<176x16xf32, #tpu.memory_space<vmem>>, %arg7: memref<32x16xf32, #tpu.memory_space<vmem>>) attributes {dimension_semantics = [#tpu.dimension_semantics<parallel>, #tpu.dimension_semantics<arbitrary>], iteration_bounds = array<i64: 2, 1>, scalar_prefetch = 0 : i64, scratch_operands = 3 : i64, tpu.core_type = #tpu.core_type<tc>, window_params = [{transform_indices = @transform_0, window_bounds = array<i64: 1, 16, 12>}, {pipeline_mode = #tpu.pipeline_mode<synchronous>, transform_indices = @transform_1, window_bounds = array<i64: 32, 176>}, {transform_indices = @transform_2, window_bounds = array<i64: 1, 32, 2>}]} {
    %c0_i32 = arith.constant 0 : i32
    %0 = arith.cmpi eq, %arg1, %c0_i32 : i32
    %1 = arith.extui %0 : i1 to i32
    %c0_i32_0 = arith.constant 0 : i32
    %2 = arith.cmpi ne, %1, %c0_i32_0 : i32
    scf.if %2 {
      %cst_63 = arith.constant 0.000000e+00 : f32
      %71 = vector.broadcast %cst_63 : f32 to vector<1x32x2xf32>
      %c0_64 = arith.constant 0 : index
      %c0_65 = arith.constant 0 : index
      %c0_66 = arith.constant 0 : index
      %72 = vector.load %arg4[%c0_64, %c0_65, %c0_66] : memref<1x32x2xf32, #tpu.memory_space<vmem>>, vector<1x32x2xf32>
      tpu.vector_store %arg4[%c0_64, %c0_65, %c0_66], %71 {strides = array<i32>} : memref<1x32x2xf32, #tpu.memory_space<vmem>>, vector<1x32x2xf32>,
    } else {
    }
    %c16_i32 = arith.constant 16 : i32
    %3 = arith.muli %arg1, %c16_i32 : i32
    %4 = tpu.assume_multiple %3, 8 : i32
    %cst = arith.constant 0.000000e+00 : f32
    %5 = vector.broadcast %cst : f32 to vector<16x8xf32>
    %c0 = arith.constant 0 : index
    %c0_1 = arith.constant 0 : index
    %6 = vector.load %arg5[%c0, %c0_1] : memref<16x32xf32, #tpu.memory_space<vmem>>, vector<16x8xf32>
    tpu.vector_store %arg5[%c0, %c0_1], %5 {strides = array<i32>} : memref<16x32xf32, #tpu.memory_space<vmem>>, vector<16x8xf32>,
    %cst_2 = arith.constant 0.000000e+00 : f32
    %7 = vector.broadcast %cst_2 : f32 to vector<16x8xf32>
    %c0_3 = arith.constant 0 : index
    %c24 = arith.constant 24 : index
    %8 = vector.load %arg5[%c0_3, %c24] : memref<16x32xf32, #tpu.memory_space<vmem>>, vector<16x8xf32>
    tpu.vector_store %arg5[%c0_3, %c24], %7 {strides = array<i32>} : memref<16x32xf32, #tpu.memory_space<vmem>>, vector<16x8xf32>,
    %cst_4 = arith.constant 0.000000e+00 : f32
    %9 = vector.broadcast %cst_4 : f32 to vector<4x32xf32>
    %c12 = arith.constant 12 : index
    %c0_5 = arith.constant 0 : index
    %10 = vector.load %arg5[%c12, %c0_5] : memref<16x32xf32, #tpu.memory_space<vmem>>, vector<4x32xf32>
    tpu.vector_store %arg5[%c12, %c0_5], %9 {strides = array<i32>} : memref<16x32xf32, #tpu.memory_space<vmem>>, vector<4x32xf32>,
    %c0_i32_6 = arith.constant 0 : i32
    %11 = arith.addi %4, %c0_i32_6 : i32
    %c0_7 = arith.constant 0 : index
    %12 = arith.index_cast %11 : i32 to index
    %c0_8 = arith.constant 0 : index
    %13 = vector.load %arg2[%c0_7, %12, %c0_8] : memref<1x16x12xf32, #tpu.memory_space<vmem>>, vector<1x16x12xf32>
    %14 = vector.shape_cast %13 : vector<1x16x12xf32> to vector<16x12xf32>
    %15 = tpu.transpose %14, [1, 0] : vector<16x12xf32> -> vector<12x16xf32>
    %c0_9 = arith.constant 0 : index
    %c8 = arith.constant 8 : index
    %16 = vector.load %arg5[%c0_9, %c8] : memref<16x32xf32, #tpu.memory_space<vmem>>, vector<12x16xf32>
    tpu.vector_store %arg5[%c0_9, %c8], %15 {strides = array<i32>} : memref<16x32xf32, #tpu.memory_space<vmem>>, vector<12x16xf32>,
    %c0_i32_10 = arith.constant 0 : i32
    %17 = arith.cmpi sgt, %arg1, %c0_i32_10 : i32
    %18 = arith.extui %17 : i1 to i32
    %c0_i32_11 = arith.constant 0 : i32
    %19 = arith.cmpi ne, %18, %c0_i32_11 : i32
    scf.if %19 {
      %c8_i32 = arith.constant 8 : i32
      %71 = arith.subi %4, %c8_i32 : i32
      %c0_63 = arith.constant 0 : index
      %72 = arith.index_cast %71 : i32 to index
      %c0_64 = arith.constant 0 : index
      %73 = vector.load %arg2[%c0_63, %72, %c0_64] : memref<1x16x12xf32, #tpu.memory_space<vmem>>, vector<1x8x12xf32>
      %74 = vector.shape_cast %73 : vector<1x8x12xf32> to vector<8x12xf32>
      %75 = tpu.transpose %74, [1, 0] : vector<8x12xf32> -> vector<12x8xf32>
      %c0_65 = arith.constant 0 : index
      %c0_66 = arith.constant 0 : index
      %76 = vector.load %arg5[%c0_65, %c0_66] : memref<16x32xf32, #tpu.memory_space<vmem>>, vector<12x8xf32>
      tpu.vector_store %arg5[%c0_65, %c0_66], %75 {strides = array<i32>} : memref<16x32xf32, #tpu.memory_space<vmem>>, vector<12x8xf32>,
    } else {
    }
    %c0_i32_12 = arith.constant 0 : i32
    %20 = arith.cmpi slt, %arg1, %c0_i32_12 : i32
    %21 = arith.extui %20 : i1 to i32
    %c0_i32_13 = arith.constant 0 : i32
    %22 = arith.cmpi ne, %21, %c0_i32_13 : i32
    scf.if %22 {
      %c16_i32_63 = arith.constant 16 : i32
      %71 = arith.addi %4, %c16_i32_63 : i32
      %c0_64 = arith.constant 0 : index
      %72 = arith.index_cast %71 : i32 to index
      %c0_65 = arith.constant 0 : index
      %73 = vector.load %arg2[%c0_64, %72, %c0_65] : memref<1x16x12xf32, #tpu.memory_space<vmem>>, vector<1x8x12xf32>
      %74 = vector.shape_cast %73 : vector<1x8x12xf32> to vector<8x12xf32>
      %75 = tpu.transpose %74, [1, 0] : vector<8x12xf32> -> vector<12x8xf32>
      %c0_66 = arith.constant 0 : index
      %c24_67 = arith.constant 24 : index
      %76 = vector.load %arg5[%c0_66, %c24_67] : memref<16x32xf32, #tpu.memory_space<vmem>>, vector<12x8xf32>
      tpu.vector_store %arg5[%c0_66, %c24_67], %75 {strides = array<i32>} : memref<16x32xf32, #tpu.memory_space<vmem>>, vector<12x8xf32>,
    } else {
    }
    %c0_14 = arith.constant 0 : index
    %c3 = arith.constant 3 : index
    %23 = vector.load %arg5[%c0_14, %c3] : memref<16x32xf32, #tpu.memory_space<vmem>>, vector<16x16xf32>
    %c0_15 = arith.constant 0 : index
    %c0_16 = arith.constant 0 : index
    %24 = vector.load %arg6[%c0_15, %c0_16] : memref<176x16xf32, #tpu.memory_space<vmem>>, vector<16x16xf32>
    tpu.vector_store %arg6[%c0_15, %c0_16], %23 {strides = array<i32>} : memref<176x16xf32, #tpu.memory_space<vmem>>, vector<16x16xf32>,
    %c0_17 = arith.constant 0 : index
    %c4 = arith.constant 4 : index
    %25 = vector.load %arg5[%c0_17, %c4] : memref<16x32xf32, #tpu.memory_space<vmem>>, vector<16x16xf32>
    %c16 = arith.constant 16 : index
    %c0_18 = arith.constant 0 : index
    %26 = vector.load %arg6[%c16, %c0_18] : memref<176x16xf32, #tpu.memory_space<vmem>>, vector<16x16xf32>
    tpu.vector_store %arg6[%c16, %c0_18], %25 {strides = array<i32>} : memref<176x16xf32, #tpu.memory_space<vmem>>, vector<16x16xf32>,
    %c0_19 = arith.constant 0 : index
    %c5 = arith.constant 5 : index
    %27 = vector.load %arg5[%c0_19, %c5] : memref<16x32xf32, #tpu.memory_space<vmem>>, vector<16x16xf32>
    %c32 = arith.constant 32 : index
    %c0_20 = arith.constant 0 : index
    %28 = vector.load %arg6[%c32, %c0_20] : memref<176x16xf32, #tpu.memory_space<vmem>>, vector<16x16xf32>
    tpu.vector_store %arg6[%c32, %c0_20], %27 {strides = array<i32>} : memref<176x16xf32, #tpu.memory_space<vmem>>, vector<16x16xf32>,
    %c0_21 = arith.constant 0 : index
    %c6 = arith.constant 6 : index
    %29 = vector.load %arg5[%c0_21, %c6] : memref<16x32xf32, #tpu.memory_space<vmem>>, vector<16x16xf32>
    %c48 = arith.constant 48 : index
    %c0_22 = arith.constant 0 : index
    %30 = vector.load %arg6[%c48, %c0_22] : memref<176x16xf32, #tpu.memory_space<vmem>>, vector<16x16xf32>
    tpu.vector_store %arg6[%c48, %c0_22], %29 {strides = array<i32>} : memref<176x16xf32, #tpu.memory_space<vmem>>, vector<16x16xf32>,
    %c0_23 = arith.constant 0 : index
    %c7 = arith.constant 7 : index
    %31 = vector.load %arg5[%c0_23, %c7] : memref<16x32xf32, #tpu.memory_space<vmem>>, vector<16x16xf32>
    %c64 = arith.constant 64 : index
    %c0_24 = arith.constant 0 : index
    %32 = vector.load %arg6[%c64, %c0_24] : memref<176x16xf32, #tpu.memory_space<vmem>>, vector<16x16xf32>
    tpu.vector_store %arg6[%c64, %c0_24], %31 {strides = array<i32>} : memref<176x16xf32, #tpu.memory_space<vmem>>, vector<16x16xf32>,
    %c0_25 = arith.constant 0 : index
    %c8_26 = arith.constant 8 : index
    %33 = vector.load %arg5[%c0_25, %c8_26] : memref<16x32xf32, #tpu.memory_space<vmem>>, vector<16x16xf32>
    %c80 = arith.constant 80 : index
    %c0_27 = arith.constant 0 : index
    %34 = vector.load %arg6[%c80, %c0_27] : memref<176x16xf32, #tpu.memory_space<vmem>>, vector<16x16xf32>
    tpu.vector_store %arg6[%c80, %c0_27], %33 {strides = array<i32>} : memref<176x16xf32, #tpu.memory_space<vmem>>, vector<16x16xf32>,
    %c0_28 = arith.constant 0 : index
    %c9 = arith.constant 9 : index
    %35 = vector.load %arg5[%c0_28, %c9] : memref<16x32xf32, #tpu.memory_space<vmem>>, vector<16x16xf32>
    %c96 = arith.constant 96 : index
    %c0_29 = arith.constant 0 : index
    %36 = vector.load %arg6[%c96, %c0_29] : memref<176x16xf32, #tpu.memory_space<vmem>>, vector<16x16xf32>
    tpu.vector_store %arg6[%c96, %c0_29], %35 {strides = array<i32>} : memref<176x16xf32, #tpu.memory_space<vmem>>, vector<16x16xf32>,
    %c0_30 = arith.constant 0 : index
    %c10 = arith.constant 10 : index
    %37 = vector.load %arg5[%c0_30, %c10] : memref<16x32xf32, #tpu.memory_space<vmem>>, vector<16x16xf32>
    %c112 = arith.constant 112 : index
    %c0_31 = arith.constant 0 : index
    %38 = vector.load %arg6[%c112, %c0_31] : memref<176x16xf32, #tpu.memory_space<vmem>>, vector<16x16xf32>
    tpu.vector_store %arg6[%c112, %c0_31], %37 {strides = array<i32>} : memref<176x16xf32, #tpu.memory_space<vmem>>, vector<16x16xf32>,
    %c0_32 = arith.constant 0 : index
    %c11 = arith.constant 11 : index
    %39 = vector.load %arg5[%c0_32, %c11] : memref<16x32xf32, #tpu.memory_space<vmem>>, vector<16x16xf32>
    %c128 = arith.constant 128 : index
    %c0_33 = arith.constant 0 : index
    %40 = vector.load %arg6[%c128, %c0_33] : memref<176x16xf32, #tpu.memory_space<vmem>>, vector<16x16xf32>
    tpu.vector_store %arg6[%c128, %c0_33], %39 {strides = array<i32>} : memref<176x16xf32, #tpu.memory_space<vmem>>, vector<16x16xf32>,
    %c0_34 = arith.constant 0 : index
    %c12_35 = arith.constant 12 : index
    %41 = vector.load %arg5[%c0_34, %c12_35] : memref<16x32xf32, #tpu.memory_space<vmem>>, vector<16x16xf32>
    %c144 = arith.constant 144 : index
    %c0_36 = arith.constant 0 : index
    %42 = vector.load %arg6[%c144, %c0_36] : memref<176x16xf32, #tpu.memory_space<vmem>>, vector<16x16xf32>
    tpu.vector_store %arg6[%c144, %c0_36], %41 {strides = array<i32>} : memref<176x16xf32, #tpu.memory_space<vmem>>, vector<16x16xf32>,
    %c0_37 = arith.constant 0 : index
    %c13 = arith.constant 13 : index
    %43 = vector.load %arg5[%c0_37, %c13] : memref<16x32xf32, #tpu.memory_space<vmem>>, vector<16x16xf32>
    %c160 = arith.constant 160 : index
    %c0_38 = arith.constant 0 : index
    %44 = vector.load %arg6[%c160, %c0_38] : memref<176x16xf32, #tpu.memory_space<vmem>>, vector<16x16xf32>
    tpu.vector_store %arg6[%c160, %c0_38], %43 {strides = array<i32>} : memref<176x16xf32, #tpu.memory_space<vmem>>, vector<16x16xf32>,
    %c0_39 = arith.constant 0 : index
    %c0_40 = arith.constant 0 : index
    %45 = vector.load %arg3[%c0_39, %c0_40] : memref<32x176xf32, #tpu.memory_space<vmem>>, vector<32x176xf32>
    %c0_41 = arith.constant 0 : index
    %c0_42 = arith.constant 0 : index
    %46 = vector.load %arg6[%c0_41, %c0_42] : memref<176x16xf32, #tpu.memory_space<vmem>>, vector<176x16xf32>
    %cst_43 = arith.constant dense<0.000000e+00> : vector<32x16xf32>
    %47 = tpu.matmul %45, %46, %cst_43 {dimension_numbers = #tpu.dot_dimension_numbers<[1], [0], [0], [1], [0, 0, 1, 1], [], []>} : vector<32x176xf32>, vector<176x16xf32>, vector<32x16xf32> -> vector<32x16xf32>
    %c0_44 = arith.constant 0 : index
    %c0_45 = arith.constant 0 : index
    %48 = vector.load %arg7[%c0_44, %c0_45] : memref<32x16xf32, #tpu.memory_space<vmem>>, vector<32x16xf32>
    tpu.vector_store %arg7[%c0_44, %c0_45], %47 {strides = array<i32>} : memref<32x16xf32, #tpu.memory_space<vmem>>, vector<32x16xf32>,
    %cst_46 = arith.constant 0.000000e+00 : f32
    %49 = vector.broadcast %cst_46 : f32 to vector<32x1xf32>
    %cst_47 = arith.constant 0.000000e+00 : f32
    %50 = vector.broadcast %cst_47 : f32 to vector<32x1xf32>
    %c0_48 = arith.constant 0 : index
    %c0_49 = arith.constant 0 : index
    %51 = vector.load %arg7[%c0_48, %c0_49] : memref<32x16xf32, #tpu.memory_space<vmem>>, vector<32x16xf32>
    %cst_50 = arith.constant dense<0.000000e+00> : vector<32xf32>
    %52 = vector.multi_reduction <add>, %51, %cst_50 [1] : vector<32x16xf32> to vector<32xf32>
    %53 = vector.shape_cast %52 : vector<32xf32> to vector<32x1xf32>
    %54 = arith.addf %49, %53 : vector<32x1xf32>
    %55 = arith.mulf %51, %51 : vector<32x16xf32>
    %cst_51 = arith.constant dense<0.000000e+00> : vector<32xf32>
    %56 = vector.multi_reduction <add>, %55, %cst_51 [1] : vector<32x16xf32> to vector<32xf32>
    %57 = vector.shape_cast %56 : vector<32xf32> to vector<32x1xf32>
    %58 = arith.addf %50, %57 : vector<32x1xf32>
    %c0_52 = arith.constant 0 : index
    %c0_53 = arith.constant 0 : index
    %c0_54 = arith.constant 0 : index
    %59 = vector.load %arg4[%c0_52, %c0_53, %c0_54] : memref<1x32x2xf32, #tpu.memory_space<vmem>>, vector<1x32x1xf32>
    %60 = vector.shape_cast %59 : vector<1x32x1xf32> to vector<32x1xf32>
    %61 = arith.addf %60, %54 : vector<32x1xf32>
    %c0_55 = arith.constant 0 : index
    %c0_56 = arith.constant 0 : index
    %c0_57 = arith.constant 0 : index
    %62 = vector.load %arg4[%c0_55, %c0_56, %c0_57] : memref<1x32x2xf32, #tpu.memory_space<vmem>>, vector<1x32x1xf32>
    %63 = vector.shape_cast %62 : vector<1x32x1xf32> to vector<32x1xf32>
    %64 = vector.shape_cast %61 : vector<32x1xf32> to vector<1x32x1xf32>
    tpu.vector_store %arg4[%c0_55, %c0_56, %c0_57], %64 {strides = array<i32>} : memref<1x32x2xf32, #tpu.memory_space<vmem>>, vector<1x32x1xf32>,
    %c0_58 = arith.constant 0 : index
    %c0_59 = arith.constant 0 : index
    %c1 = arith.constant 1 : index
    %65 = vector.load %arg4[%c0_58, %c0_59, %c1] : memref<1x32x2xf32, #tpu.memory_space<vmem>>, vector<1x32x1xf32>
    %66 = vector.shape_cast %65 : vector<1x32x1xf32> to vector<32x1xf32>
    %67 = arith.addf %66, %58 : vector<32x1xf32>
    %c0_60 = arith.constant 0 : index
    %c0_61 = arith.constant 0 : index
    %c1_62 = arith.constant 1 : index
    %68 = vector.load %arg4[%c0_60, %c0_61, %c1_62] : memref<1x32x2xf32, #tpu.memory_space<vmem>>, vector<1x32x1xf32>
    %69 = vector.shape_cast %68 : vector<1x32x1xf32> to vector<32x1xf32>
    %70 = vector.shape_cast %67 : vector<32x1xf32> to vector<1x32x1xf32>
    tpu.vector_store %arg4[%c0_60, %c0_61, %c1_62], %70 {strides = array<i32>} : memref<1x32x2xf32, #tpu.memory_space<vmem>>, vector<1x32x1xf32>,
    return
  }
  func.func @transform_0(%arg0: i32, %arg1: i32) -> (i32, i32, i32) {
    %c0_i32 = arith.constant 0 : i32
    %c0_i32_0 = arith.constant 0 : i32
    %c0_i32_1 = arith.constant 0 : i32
    return %arg0, %c0_i32, %c0_i32_0 : i32, i32, i32
  }
  func.func @transform_1(%arg0: i32, %arg1: i32) -> (i32, i32) {
    %c0_i32 = arith.constant 0 : i32
    %c0_i32_0 = arith.constant 0 : i32
    %c0_i32_1 = arith.constant 0 : i32
    return %c0_i32, %c0_i32_0 : i32, i32
  }
  func.func @transform_2(%arg0: i32, %arg1: i32) -> (i32, i32, i32) {
    %c0_i32 = arith.constant 0 : i32
    %c0_i32_0 = arith.constant 0 : i32
    %c0_i32_1 = arith.constant 0 : i32
    return %arg0, %c0_i32, %c0_i32_0 : i32, i32, i32
  }
}

module attributes {stable_mosaic.version = 11 : i64} {
  func.func @_apply_kernel(%arg0: i32, %arg1: i32, %arg2: memref<1x16x12xf32, #tpu.memory_space<vmem>>, %arg3: memref<32x176xf32, #tpu.memory_space<vmem>>, %arg4: memref<32x1xf32, #tpu.memory_space<vmem>>, %arg5: memref<32x1xf32, #tpu.memory_space<vmem>>, %arg6: memref<1x32x16xf32, #tpu.memory_space<vmem>>, %arg7: memref<16x32xf32, #tpu.memory_space<vmem>>, %arg8: memref<176x16xf32, #tpu.memory_space<vmem>>, %arg9: memref<32x16xf32, #tpu.memory_space<vmem>>) attributes {dimension_semantics = [#tpu.dimension_semantics<parallel>, #tpu.dimension_semantics<parallel>], iteration_bounds = array<i64: 2, 1>, scalar_prefetch = 0 : i64, scratch_operands = 3 : i64, tpu.core_type = #tpu.core_type<tc>, window_params = [{transform_indices = @transform_0, window_bounds = array<i64: 1, 16, 12>}, {pipeline_mode = #tpu.pipeline_mode<synchronous>, transform_indices = @transform_1, window_bounds = array<i64: 32, 176>}, {pipeline_mode = #tpu.pipeline_mode<synchronous>, transform_indices = @transform_2, window_bounds = array<i64: 32, 1>}, {pipeline_mode = #tpu.pipeline_mode<synchronous>, transform_indices = @transform_3, window_bounds = array<i64: 32, 1>}, {transform_indices = @transform_4, window_bounds = array<i64: 1, 32, 16>}]} {
    %c16_i32 = arith.constant 16 : i32
    %0 = arith.muli %arg1, %c16_i32 : i32
    %1 = tpu.assume_multiple %0, 8 : i32
    %cst = arith.constant 0.000000e+00 : f32
    %2 = vector.broadcast %cst : f32 to vector<16x8xf32>
    %c0 = arith.constant 0 : index
    %c0_0 = arith.constant 0 : index
    %3 = vector.load %arg7[%c0, %c0_0] : memref<16x32xf32, #tpu.memory_space<vmem>>, vector<16x8xf32>
    tpu.vector_store %arg7[%c0, %c0_0], %2 {strides = array<i32>} : memref<16x32xf32, #tpu.memory_space<vmem>>, vector<16x8xf32>,
    %cst_1 = arith.constant 0.000000e+00 : f32
    %4 = vector.broadcast %cst_1 : f32 to vector<16x8xf32>
    %c0_2 = arith.constant 0 : index
    %c24 = arith.constant 24 : index
    %5 = vector.load %arg7[%c0_2, %c24] : memref<16x32xf32, #tpu.memory_space<vmem>>, vector<16x8xf32>
    tpu.vector_store %arg7[%c0_2, %c24], %4 {strides = array<i32>} : memref<16x32xf32, #tpu.memory_space<vmem>>, vector<16x8xf32>,
    %cst_3 = arith.constant 0.000000e+00 : f32
    %6 = vector.broadcast %cst_3 : f32 to vector<4x32xf32>
    %c12 = arith.constant 12 : index
    %c0_4 = arith.constant 0 : index
    %7 = vector.load %arg7[%c12, %c0_4] : memref<16x32xf32, #tpu.memory_space<vmem>>, vector<4x32xf32>
    tpu.vector_store %arg7[%c12, %c0_4], %6 {strides = array<i32>} : memref<16x32xf32, #tpu.memory_space<vmem>>, vector<4x32xf32>,
    %c0_i32 = arith.constant 0 : i32
    %8 = arith.addi %1, %c0_i32 : i32
    %c0_5 = arith.constant 0 : index
    %9 = arith.index_cast %8 : i32 to index
    %c0_6 = arith.constant 0 : index
    %10 = vector.load %arg2[%c0_5, %9, %c0_6] : memref<1x16x12xf32, #tpu.memory_space<vmem>>, vector<1x16x12xf32>
    %11 = vector.shape_cast %10 : vector<1x16x12xf32> to vector<16x12xf32>
    %12 = tpu.transpose %11, [1, 0] : vector<16x12xf32> -> vector<12x16xf32>
    %c0_7 = arith.constant 0 : index
    %c8 = arith.constant 8 : index
    %13 = vector.load %arg7[%c0_7, %c8] : memref<16x32xf32, #tpu.memory_space<vmem>>, vector<12x16xf32>
    tpu.vector_store %arg7[%c0_7, %c8], %12 {strides = array<i32>} : memref<16x32xf32, #tpu.memory_space<vmem>>, vector<12x16xf32>,
    %c0_i32_8 = arith.constant 0 : i32
    %14 = arith.cmpi sgt, %arg1, %c0_i32_8 : i32
    %15 = arith.extui %14 : i1 to i32
    %c0_i32_9 = arith.constant 0 : i32
    %16 = arith.cmpi ne, %15, %c0_i32_9 : i32
    scf.if %16 {
      %c8_i32 = arith.constant 8 : i32
      %58 = arith.subi %1, %c8_i32 : i32
      %c0_54 = arith.constant 0 : index
      %59 = arith.index_cast %58 : i32 to index
      %c0_55 = arith.constant 0 : index
      %60 = vector.load %arg2[%c0_54, %59, %c0_55] : memref<1x16x12xf32, #tpu.memory_space<vmem>>, vector<1x8x12xf32>
      %61 = vector.shape_cast %60 : vector<1x8x12xf32> to vector<8x12xf32>
      %62 = tpu.transpose %61, [1, 0] : vector<8x12xf32> -> vector<12x8xf32>
      %c0_56 = arith.constant 0 : index
      %c0_57 = arith.constant 0 : index
      %63 = vector.load %arg7[%c0_56, %c0_57] : memref<16x32xf32, #tpu.memory_space<vmem>>, vector<12x8xf32>
      tpu.vector_store %arg7[%c0_56, %c0_57], %62 {strides = array<i32>} : memref<16x32xf32, #tpu.memory_space<vmem>>, vector<12x8xf32>,
    } else {
    }
    %c0_i32_10 = arith.constant 0 : i32
    %17 = arith.cmpi slt, %arg1, %c0_i32_10 : i32
    %18 = arith.extui %17 : i1 to i32
    %c0_i32_11 = arith.constant 0 : i32
    %19 = arith.cmpi ne, %18, %c0_i32_11 : i32
    scf.if %19 {
      %c16_i32_54 = arith.constant 16 : i32
      %58 = arith.addi %1, %c16_i32_54 : i32
      %c0_55 = arith.constant 0 : index
      %59 = arith.index_cast %58 : i32 to index
      %c0_56 = arith.constant 0 : index
      %60 = vector.load %arg2[%c0_55, %59, %c0_56] : memref<1x16x12xf32, #tpu.memory_space<vmem>>, vector<1x8x12xf32>
      %61 = vector.shape_cast %60 : vector<1x8x12xf32> to vector<8x12xf32>
      %62 = tpu.transpose %61, [1, 0] : vector<8x12xf32> -> vector<12x8xf32>
      %c0_57 = arith.constant 0 : index
      %c24_58 = arith.constant 24 : index
      %63 = vector.load %arg7[%c0_57, %c24_58] : memref<16x32xf32, #tpu.memory_space<vmem>>, vector<12x8xf32>
      tpu.vector_store %arg7[%c0_57, %c24_58], %62 {strides = array<i32>} : memref<16x32xf32, #tpu.memory_space<vmem>>, vector<12x8xf32>,
    } else {
    }
    %c0_12 = arith.constant 0 : index
    %c3 = arith.constant 3 : index
    %20 = vector.load %arg7[%c0_12, %c3] : memref<16x32xf32, #tpu.memory_space<vmem>>, vector<16x16xf32>
    %c0_13 = arith.constant 0 : index
    %c0_14 = arith.constant 0 : index
    %21 = vector.load %arg8[%c0_13, %c0_14] : memref<176x16xf32, #tpu.memory_space<vmem>>, vector<16x16xf32>
    tpu.vector_store %arg8[%c0_13, %c0_14], %20 {strides = array<i32>} : memref<176x16xf32, #tpu.memory_space<vmem>>, vector<16x16xf32>,
    %c0_15 = arith.constant 0 : index
    %c4 = arith.constant 4 : index
    %22 = vector.load %arg7[%c0_15, %c4] : memref<16x32xf32, #tpu.memory_space<vmem>>, vector<16x16xf32>
    %c16 = arith.constant 16 : index
    %c0_16 = arith.constant 0 : index
    %23 = vector.load %arg8[%c16, %c0_16] : memref<176x16xf32, #tpu.memory_space<vmem>>, vector<16x16xf32>
    tpu.vector_store %arg8[%c16, %c0_16], %22 {strides = array<i32>} : memref<176x16xf32, #tpu.memory_space<vmem>>, vector<16x16xf32>,
    %c0_17 = arith.constant 0 : index
    %c5 = arith.constant 5 : index
    %24 = vector.load %arg7[%c0_17, %c5] : memref<16x32xf32, #tpu.memory_space<vmem>>, vector<16x16xf32>
    %c32 = arith.constant 32 : index
    %c0_18 = arith.constant 0 : index
    %25 = vector.load %arg8[%c32, %c0_18] : memref<176x16xf32, #tpu.memory_space<vmem>>, vector<16x16xf32>
    tpu.vector_store %arg8[%c32, %c0_18], %24 {strides = array<i32>} : memref<176x16xf32, #tpu.memory_space<vmem>>, vector<16x16xf32>,
    %c0_19 = arith.constant 0 : index
    %c6 = arith.constant 6 : index
    %26 = vector.load %arg7[%c0_19, %c6] : memref<16x32xf32, #tpu.memory_space<vmem>>, vector<16x16xf32>
    %c48 = arith.constant 48 : index
    %c0_20 = arith.constant 0 : index
    %27 = vector.load %arg8[%c48, %c0_20] : memref<176x16xf32, #tpu.memory_space<vmem>>, vector<16x16xf32>
    tpu.vector_store %arg8[%c48, %c0_20], %26 {strides = array<i32>} : memref<176x16xf32, #tpu.memory_space<vmem>>, vector<16x16xf32>,
    %c0_21 = arith.constant 0 : index
    %c7 = arith.constant 7 : index
    %28 = vector.load %arg7[%c0_21, %c7] : memref<16x32xf32, #tpu.memory_space<vmem>>, vector<16x16xf32>
    %c64 = arith.constant 64 : index
    %c0_22 = arith.constant 0 : index
    %29 = vector.load %arg8[%c64, %c0_22] : memref<176x16xf32, #tpu.memory_space<vmem>>, vector<16x16xf32>
    tpu.vector_store %arg8[%c64, %c0_22], %28 {strides = array<i32>} : memref<176x16xf32, #tpu.memory_space<vmem>>, vector<16x16xf32>,
    %c0_23 = arith.constant 0 : index
    %c8_24 = arith.constant 8 : index
    %30 = vector.load %arg7[%c0_23, %c8_24] : memref<16x32xf32, #tpu.memory_space<vmem>>, vector<16x16xf32>
    %c80 = arith.constant 80 : index
    %c0_25 = arith.constant 0 : index
    %31 = vector.load %arg8[%c80, %c0_25] : memref<176x16xf32, #tpu.memory_space<vmem>>, vector<16x16xf32>
    tpu.vector_store %arg8[%c80, %c0_25], %30 {strides = array<i32>} : memref<176x16xf32, #tpu.memory_space<vmem>>, vector<16x16xf32>,
    %c0_26 = arith.constant 0 : index
    %c9 = arith.constant 9 : index
    %32 = vector.load %arg7[%c0_26, %c9] : memref<16x32xf32, #tpu.memory_space<vmem>>, vector<16x16xf32>
    %c96 = arith.constant 96 : index
    %c0_27 = arith.constant 0 : index
    %33 = vector.load %arg8[%c96, %c0_27] : memref<176x16xf32, #tpu.memory_space<vmem>>, vector<16x16xf32>
    tpu.vector_store %arg8[%c96, %c0_27], %32 {strides = array<i32>} : memref<176x16xf32, #tpu.memory_space<vmem>>, vector<16x16xf32>,
    %c0_28 = arith.constant 0 : index
    %c10 = arith.constant 10 : index
    %34 = vector.load %arg7[%c0_28, %c10] : memref<16x32xf32, #tpu.memory_space<vmem>>, vector<16x16xf32>
    %c112 = arith.constant 112 : index
    %c0_29 = arith.constant 0 : index
    %35 = vector.load %arg8[%c112, %c0_29] : memref<176x16xf32, #tpu.memory_space<vmem>>, vector<16x16xf32>
    tpu.vector_store %arg8[%c112, %c0_29], %34 {strides = array<i32>} : memref<176x16xf32, #tpu.memory_space<vmem>>, vector<16x16xf32>,
    %c0_30 = arith.constant 0 : index
    %c11 = arith.constant 11 : index
    %36 = vector.load %arg7[%c0_30, %c11] : memref<16x32xf32, #tpu.memory_space<vmem>>, vector<16x16xf32>
    %c128 = arith.constant 128 : index
    %c0_31 = arith.constant 0 : index
    %37 = vector.load %arg8[%c128, %c0_31] : memref<176x16xf32, #tpu.memory_space<vmem>>, vector<16x16xf32>
    tpu.vector_store %arg8[%c128, %c0_31], %36 {strides = array<i32>} : memref<176x16xf32, #tpu.memory_space<vmem>>, vector<16x16xf32>,
    %c0_32 = arith.constant 0 : index
    %c12_33 = arith.constant 12 : index
    %38 = vector.load %arg7[%c0_32, %c12_33] : memref<16x32xf32, #tpu.memory_space<vmem>>, vector<16x16xf32>
    %c144 = arith.constant 144 : index
    %c0_34 = arith.constant 0 : index
    %39 = vector.load %arg8[%c144, %c0_34] : memref<176x16xf32, #tpu.memory_space<vmem>>, vector<16x16xf32>
    tpu.vector_store %arg8[%c144, %c0_34], %38 {strides = array<i32>} : memref<176x16xf32, #tpu.memory_space<vmem>>, vector<16x16xf32>,
    %c0_35 = arith.constant 0 : index
    %c13 = arith.constant 13 : index
    %40 = vector.load %arg7[%c0_35, %c13] : memref<16x32xf32, #tpu.memory_space<vmem>>, vector<16x16xf32>
    %c160 = arith.constant 160 : index
    %c0_36 = arith.constant 0 : index
    %41 = vector.load %arg8[%c160, %c0_36] : memref<176x16xf32, #tpu.memory_space<vmem>>, vector<16x16xf32>
    tpu.vector_store %arg8[%c160, %c0_36], %40 {strides = array<i32>} : memref<176x16xf32, #tpu.memory_space<vmem>>, vector<16x16xf32>,
    %c0_37 = arith.constant 0 : index
    %c0_38 = arith.constant 0 : index
    %42 = vector.load %arg3[%c0_37, %c0_38] : memref<32x176xf32, #tpu.memory_space<vmem>>, vector<32x176xf32>
    %c0_39 = arith.constant 0 : index
    %c0_40 = arith.constant 0 : index
    %43 = vector.load %arg8[%c0_39, %c0_40] : memref<176x16xf32, #tpu.memory_space<vmem>>, vector<176x16xf32>
    %cst_41 = arith.constant dense<0.000000e+00> : vector<32x16xf32>
    %44 = tpu.matmul %42, %43, %cst_41 {dimension_numbers = #tpu.dot_dimension_numbers<[1], [0], [0], [1], [0, 0, 1, 1], [], []>} : vector<32x176xf32>, vector<176x16xf32>, vector<32x16xf32> -> vector<32x16xf32>
    %c0_42 = arith.constant 0 : index
    %c0_43 = arith.constant 0 : index
    %45 = vector.load %arg9[%c0_42, %c0_43] : memref<32x16xf32, #tpu.memory_space<vmem>>, vector<32x16xf32>
    tpu.vector_store %arg9[%c0_42, %c0_43], %44 {strides = array<i32>} : memref<32x16xf32, #tpu.memory_space<vmem>>, vector<32x16xf32>,
    %c0_44 = arith.constant 0 : index
    %c0_45 = arith.constant 0 : index
    %46 = vector.load %arg4[%c0_44, %c0_45] : memref<32x1xf32, #tpu.memory_space<vmem>>, vector<32x1xf32>
    %c0_46 = arith.constant 0 : index
    %c0_47 = arith.constant 0 : index
    %47 = vector.load %arg5[%c0_46, %c0_47] : memref<32x1xf32, #tpu.memory_space<vmem>>, vector<32x1xf32>
    %c0_48 = arith.constant 0 : index
    %c0_49 = arith.constant 0 : index
    %48 = vector.load %arg9[%c0_48, %c0_49] : memref<32x16xf32, #tpu.memory_space<vmem>>, vector<32x16xf32>
    %49 = vector.broadcast %46 : vector<32x1xf32> to vector<32x16xf32>
    %50 = arith.mulf %48, %49 : vector<32x16xf32>
    %51 = vector.broadcast %47 : vector<32x1xf32> to vector<32x16xf32>
    %52 = arith.addf %50, %51 : vector<32x16xf32>
    %cst_50 = arith.constant 0.000000e+00 : f32
    %53 = vector.broadcast %cst_50 : f32 to vector<32x16xf32>
    %54 = arith.maximumf %52, %53 : vector<32x16xf32>
    %c0_51 = arith.constant 0 : index
    %c0_52 = arith.constant 0 : index
    %c0_53 = arith.constant 0 : index
    %55 = vector.load %arg6[%c0_51, %c0_52, %c0_53] : memref<1x32x16xf32, #tpu.memory_space<vmem>>, vector<1x32x16xf32>
    %56 = vector.shape_cast %55 : vector<1x32x16xf32> to vector<32x16xf32>
    %57 = vector.shape_cast %54 : vector<32x16xf32> to vector<1x32x16xf32>
    tpu.vector_store %arg6[%c0_51, %c0_52, %c0_53], %57 {strides = array<i32>} : memref<1x32x16xf32, #tpu.memory_space<vmem>>, vector<1x32x16xf32>,
    return
  }
  func.func @transform_0(%arg0: i32, %arg1: i32) -> (i32, i32, i32) {
    %c0_i32 = arith.constant 0 : i32
    %c0_i32_0 = arith.constant 0 : i32
    %c0_i32_1 = arith.constant 0 : i32
    return %arg0, %c0_i32, %c0_i32_0 : i32, i32, i32
  }
  func.func @transform_1(%arg0: i32, %arg1: i32) -> (i32, i32) {
    %c0_i32 = arith.constant 0 : i32
    %c0_i32_0 = arith.constant 0 : i32
    %c0_i32_1 = arith.constant 0 : i32
    return %c0_i32, %c0_i32_0 : i32, i32
  }
  func.func @transform_2(%arg0: i32, %arg1: i32) -> (i32, i32) {
    %c0_i32 = arith.constant 0 : i32
    %c0_i32_0 = arith.constant 0 : i32
    %c0_i32_1 = arith.constant 0 : i32
    return %c0_i32, %c0_i32_0 : i32, i32
  }
  func.func @transform_3(%arg0: i32, %arg1: i32) -> (i32, i32) {
    %c0_i32 = arith.constant 0 : i32
    %c0_i32_0 = arith.constant 0 : i32
    %c0_i32_1 = arith.constant 0 : i32
    return %c0_i32, %c0_i32_0 : i32, i32
  }
  func.func @transform_4(%arg0: i32, %arg1: i32) -> (i32, i32, i32) {
    %c0_i32 = arith.constant 0 : i32
    %c0_i32_0 = arith.constant 0 : i32
    return %arg0, %c0_i32, %arg1 : i32, i32, i32
  }
}

</mosaic_0001>

<bundles_post_ra>
// kernel: conv_embedding.2
= control target key start
LH: loop header
LB: loop body
LE: loop exit
PB: predicated region body
PF: predicated region fallthrough
CT: control target
= control target key end

     0   :  { %s865_s9 = smov 0   ;;  %s867_s10 = smov 0   ;;  %s1043_s0 = inlined_call_operand.vmem [shape: f32[2,16,12], index: 0, kind: input, shape index: {}]   ;;  %s1044_s1 = inlined_call_operand.vmem [shape: f32[32,176], index: 1, kind: input, shape index: {}]   ;;  %s1045_s2 = inlined_call_operand.vmem [shape: f32[2,32,2], index: 2, kind: output, shape index: {}]  }
   0x1   :  { %s869_s11 = smov 0  }
   0x2 LB: > { %s24_s12 = sadd.s32 1, %s831_s10  ;;  %p717_p0 = scmp.ge.s32.totalorder %s835_s11, 1  ;;  %s835_s11 = sphi %s869_s11, %s12_s11   ;;  %s831_s10 = sphi %s867_s10, %s1047_s10   ;;  %s827_s9 = sphi %s865_s9, %s1046_s9  }
   0x3   : > { %p26_p1 = scmp.ge.s32.totalorder %s24_s12, 2  ;;  %p124_p2 = scmp.lt.s32.totalorder %s835_s11, 3 }
   0x5   : > { %s1049_s12 = smov (%p26_p1, %s24_s12), 0  ;;  %p125_p3 = pnand %p717_p0, %p124_p2 }
   0x6   : > { %p146_p4 = scmp.lt.s32.totalorder (!%p125_p3), %s827_s9, 1  ;;  %s838_s17 = smov (!%p125_p3), 8  }
   0x7   : > { %128 = sbr.rel (%p125_p3) target bundleno = 817 (0x331), region = 28  ;;  %s839_s18 = smov (!%p125_p3), 118  }
   0x8   : > { %s840_s19 = smov (!%p125_p3), 124   ;;  %s841_s20 = smov (!%p125_p3), 125  }
   0x9   : > { %s842_s21 = smov (!%p125_p3), 119   ;;  %s843_s22 = smov (!%p125_p3), 115  }
   0xa   : > { %s844_s23 = smov (!%p125_p3), 120   ;;  %s845_s24 = smov (!%p125_p3), 116  }
   0xb   : > { %s846_s25 = smov (!%p125_p3), 121   ;;  %s847_s26 = smov (!%p125_p3), 117  }
   0xc   : > { %s1051_s9 = smov (!%p146_p4, %s827_s9), 1  ;;  %vm166_vm0 = vcmask 64512   ;;  %vm169_vm1 = vcmask 261312   ;;  %vm172_vm2 = vcmask 257024   ;;  %v837_v2 = vmov 0.0   ;;  %s848_s27 = smov 122  }
   0xd   : > { %s730_s13 = sshll.u32 %s1051_s9, 4  ;;  %168 = vst.msk [vmem:[#allocation2 + $0x8] sm:$0xff] %vm166_vm0, %v837_v2  ;;  %167 = vst.msk [vmem:[#allocation2] sm:$0xff] %vm166_vm0, %v837_v2  ;;  %489 = vmatprep.subr.mxu0 %v837_v2  ;;  %732 = vmatprep.subr.mxu1 %v837_v2  ;;  %vm219_vm3 = vcmask 191552   ;;  %vm217_vm4 = vcmask 195648   ;;  %s849_s28 = smov 123  }
   0xe   : > { %s150_s16 = scalar_lea.vmem %s1043_s0, %s730_s13  ;;  %171 = vst.msk [vmem:[#allocation2 + $0x8] sm:$0xff] %vm169_vm1, %v837_v2  ;;  %170 = vst.msk [vmem:[#allocation2] sm:$0xff] %vm169_vm1, %v837_v2  ;;  %v447_v9 = vld [vmem:[%s1044_s1 + $0x8] sm:$0xff]  ;;  %vm476_vm5 = vcmask 392192   ;;  %vm323_vm6 = vcmask 130048   ;;  %v446_v54 = vld [vmem:[%s1044_s1] sm:$0xff] }
   0xf   : > { %v175_v0 = vld [vmem:[%s150_s16] sm:$0xff]  ;;  %v176_v1 = vld [vmem:[%s150_s16 + $0x8] sm:$0xff]  ;;  %173 = vst.msk [vmem:[#allocation2 + $0xc] sm:$0xf] %vm172_vm2, %v837_v2  ;;  %724 = vmatprep.mubr.msk.f32.mxu0 %vm476_vm5, %v447_v9  ;;  %v449_v57 = vld [vmem:[%s1044_s1 + $0x18] sm:$0xff]  ;;  %vm160_vm7 = vcmask 15360  }
  0x10   : > { %177 = vxpose.xlu0.b32.start [1/2] (short) (narrow) %v175_v0, 16  ;;  %v451_v10 = vld [vmem:[%s1044_s1 + $0x28] sm:$0xff]  ;;  %v450_v55 = vld [vmem:[%s1044_s1 + $0x20] sm:$0xff]  ;;  %v453_v58 = vld [vmem:[%s1044_s1 + $0x38] sm:$0xff]  ;;  %vm626_vm8 = vcmask 7168   ;;  %vm639_vm9 = vcmask 15368  }
  0x11   : > { %726 = vmatprep.mubr.msk.f32.mxu1 %vm476_vm5, %v451_v10  ;;  %v448_v59 = vld [vmem:[%s1044_s1 + $0x10] sm:$0xff] }
  0x12   : > { %v452_v60 = vld [vmem:[%s1044_s1 + $0x30] sm:$0xff] }
  0x14   : > { %178 = vxpose.xlu0.b32.end [2/2] (short) (narrow) %v176_v1, 16 }
  0x8c   : > { %v193_v3 = vpop.trf.xlu0 }
  0x90   : > { %v194_v4 = vpop.trf.xlu0 }
  0x91   : > { %213 = vrot.lane.b32.xlu1 %v194_v4, %s838_s17 }
  0x95   : > { %211 = vrot.lane.b32.xlu1 %v193_v3, %s838_s17 }
 0x103   : > { %v214_v5 = vpop.permute.xlu1 %213 }
 0x104   : > { %220 = vst.msk [vmem:[#allocation2 + $0x8] sm:$0xf] %vm219_vm3, %v214_v5 }
 0x107   : > { %v212_v6 = vpop.permute.xlu1 %211 }
 0x108   : > { %218 = vst.msk [vmem:[#allocation2] sm:$0xff] %vm217_vm4, %v212_v6 }
 0x10b   : > { %v399_v7 = vld [vmem:[#allocation2 + $0x8] sm:$0xff] }
 0x10c   : > { %404 = vrot.lane.b32.xlu0 %v399_v7, %s839_s18 }
 0x10f   : > { %v398_v8 = vld [vmem:[#allocation2] sm:$0xff] }
 0x110   : > { %332 = vrot.lane.b32.xlu0 %v399_v7, %s840_s19  ;;  %402 = vrot.lane.b32.xlu1 %v398_v8, %s839_s18 }
 0x114   : > { %319 = vrot.lane.b32.xlu0 %v399_v7, %s841_s20  ;;  %390 = vrot.lane.b32.xlu1 %v398_v8, %s842_s21 }
 0x118   : > { %440 = vrot.lane.b32.xlu0 %v399_v7, %s843_s22  ;;  %378 = vrot.lane.b32.xlu1 %v398_v8, %s844_s23 }
 0x11c   : > { %428 = vrot.lane.b32.xlu0 %v399_v7, %s845_s24  ;;  %366 = vrot.lane.b32.xlu1 %v398_v8, %s846_s25 }
 0x120   : > { %416 = vrot.lane.b32.xlu0 %v399_v7, %s847_s26  ;;  %354 = vrot.lane.b32.xlu1 %v398_v8, %s848_s27 }
 0x124   : > { %392 = vrot.lane.b32.xlu1 %v399_v7, %s842_s21  ;;  %s731_s21 = sshll.u32 %s1051_s9, 5 }
 0x128   : > { %380 = vrot.lane.b32.xlu1 %v399_v7, %s844_s23 }
 0x12c   : > { %368 = vrot.lane.b32.xlu1 %v399_v7, %s846_s25 }
 0x130   : > { %356 = vrot.lane.b32.xlu1 %v399_v7, %s848_s27 }
 0x134   : > { %344 = vrot.lane.b32.xlu1 %v399_v7, %s849_s28 }
 0x138   : > { %342 = vrot.lane.b32.xlu1 %v398_v8, %s849_s28 }
 0x13c   : > { %330 = vrot.lane.b32.xlu1 %v398_v8, %s840_s19 }
 0x140   : > { %317 = vrot.lane.b32.xlu1 %v398_v8, %s841_s20 }
 0x144   : > { %438 = vrot.lane.b32.xlu1 %v398_v8, %s843_s22 }
 0x148   : > { %426 = vrot.lane.b32.xlu1 %v398_v8, %s845_s24  ;;  %s992_s24 = scalar_lea.vmem %s1045_s2, %s731_s21 }
 0x149   : > { %161 = vst.msk [vmem:[%s992_s24] sm:$0xff] %vm160_vm7, %v837_v2  ;;  %162 = vst.msk [vmem:[%s992_s24 + $0x8] sm:$0xff] %vm160_vm7, %v837_v2 }
 0x14a   : > { %163 = vst.msk [vmem:[%s992_s24 + $0x10] sm:$0xff] %vm160_vm7, %v837_v2  ;;  %164 = vst.msk [vmem:[%s992_s24 + $0x18] sm:$0xff] %vm160_vm7, %v837_v2 }
 0x14c   : > { %414 = vrot.lane.b32.xlu1 %v398_v8, %s847_s26 }
 0x17e   : > { %v405_v11 = vpop.permute.xlu0 %404 }
 0x17f   : > { %409 = vst.msk [vmem:[#allocation3 + $0x78] sm:$0xff] %vm323_vm6, %v405_v11 }
 0x182   : > { %v333_v12 = vpop.permute.xlu0 %332  ;;  %v403_v13 = vpop.permute.xlu1 %402 }
 0x183   : > { %337 = vst.msk [vmem:[#allocation3 + $0x18] sm:$0xff] %vm323_vm6, %v333_v12  ;;  %408 = vst.msk [vmem:[#allocation3 + $0x70] sm:$0xff] %vm323_vm6, %v403_v13 }
 0x186   : > { %v320_v14 = vpop.permute.xlu0 %319  ;;  %v391_v15 = vpop.permute.xlu1 %390  ;;  %v469_v16 = vld [vmem:[#allocation3 + $0x78] sm:$0xff] }
 0x187   : > { %325 = vst.msk [vmem:[#allocation3 + $0x8] sm:$0xff] %vm323_vm6, %v320_v14  ;;  %396 = vst.msk [vmem:[#allocation3 + $0x60] sm:$0xff] %vm323_vm6, %v391_v15  ;;  %490 = vmatpush1.msra.mxu0 %v469_v16  ;;  %754 = vmatpush1.msra.mxu1 %v469_v16 }
 0x188   : > { %491 = vmatprep.subr.mxu0 %v837_v2  ;;  %733 = vmatprep.subr.mxu1 %v837_v2 }
 0x18a   : > { %v441_v17 = vpop.permute.xlu0 %440  ;;  %v379_v18 = vpop.permute.xlu1 %378  ;;  %v468_v19 = vld [vmem:[#allocation3 + $0x70] sm:$0xff]  ;;  %v457_v42 = vld [vmem:[#allocation3 + $0x18] sm:$0xff] }
 0x18b   : > { %445 = vst.msk [vmem:[#allocation3 + $0xa8] sm:$0xff] %vm323_vm6, %v441_v17  ;;  %384 = vst.msk [vmem:[#allocation3 + $0x50] sm:$0xff] %vm323_vm6, %v379_v18  ;;  %492 = vmatpush1.msra.mxu0 %v468_v19  ;;  %755 = vmatpush1.msra.mxu1 %v468_v19 }
 0x18c   : > { %493 = vmatprep.subr.mxu0 %v837_v2  ;;  %734 = vmatprep.subr.mxu1 %v837_v2 }
 0x18e   : > { %v429_v20 = vpop.permute.xlu0 %428  ;;  %v367_v21 = vpop.permute.xlu1 %366  ;;  %v466_v28 = vld [vmem:[#allocation3 + $0x60] sm:$0xff]  ;;  %v455_v45 = vld [vmem:[#allocation3 + $0x8] sm:$0xff] }
 0x18f   : > { %433 = vst.msk [vmem:[#allocation3 + $0x98] sm:$0xff] %vm323_vm6, %v429_v20  ;;  %372 = vst.msk [vmem:[#allocation3 + $0x40] sm:$0xff] %vm323_vm6, %v367_v21  ;;  %v618_v21 = vld [vmem:[%s992_s24] sm:$0xff] }
 0x192   : > { %v417_v22 = vpop.permute.xlu0 %416  ;;  %v355_v23 = vpop.permute.xlu1 %354  ;;  %v464_v31 = vld [vmem:[#allocation3 + $0x50] sm:$0xff]  ;;  %v475_v48 = vld [vmem:[#allocation3 + $0xa8] sm:$0xff] }
 0x193   : > { %421 = vst.msk [vmem:[#allocation3 + $0x88] sm:$0xff] %vm323_vm6, %v417_v22  ;;  %360 = vst.msk [vmem:[#allocation3 + $0x30] sm:$0xff] %vm323_vm6, %v355_v23 }
 0x196   : > { %v393_v24 = vpop.permute.xlu1 %392  ;;  %v462_v34 = vld [vmem:[#allocation3 + $0x40] sm:$0xff]  ;;  %v473_v51 = vld [vmem:[#allocation3 + $0x98] sm:$0xff] }
 0x197   : > { %397 = vst.msk [vmem:[#allocation3 + $0x68] sm:$0xff] %vm323_vm6, %v393_v24  ;;  %v620_v24 = vld [vmem:[%s992_s24 + $0x10] sm:$0xff] }
 0x19a   : > { %v381_v25 = vpop.permute.xlu1 %380  ;;  %v460_v37 = vld [vmem:[#allocation3 + $0x30] sm:$0xff]  ;;  %v471_v53 = vld [vmem:[#allocation3 + $0x88] sm:$0xff] }
 0x19b   : > { %385 = vst.msk [vmem:[#allocation3 + $0x58] sm:$0xff] %vm323_vm6, %v381_v25  ;;  %v619_v25 = vld [vmem:[%s992_s24 + $0x8] sm:$0xff] }
 0x19e   : > { %v369_v26 = vpop.permute.xlu1 %368  ;;  %v467_v27 = vld [vmem:[#allocation3 + $0x68] sm:$0xff] }
 0x19f   : > { %373 = vst.msk [vmem:[#allocation3 + $0x48] sm:$0xff] %vm323_vm6, %v369_v26  ;;  %494 = vmatpush1.msra.mxu0 %v467_v27  ;;  %756 = vmatpush1.msra.mxu1 %v467_v27 }
 0x1a0   : > { %495 = vmatprep.subr.mxu0 %v837_v2  ;;  %735 = vmatprep.subr.mxu1 %v837_v2 }
 0x1a1   : > { %496 = vmatpush1.msra.mxu0 %v466_v28  ;;  %757 = vmatpush1.msra.mxu1 %v466_v28 }
 0x1a2   : > { %497 = vmatprep.subr.mxu0 %v837_v2  ;;  %736 = vmatprep.subr.mxu1 %v837_v2  ;;  %v357_v29 = vpop.permute.xlu1 %356  ;;  %v465_v30 = vld [vmem:[#allocation3 + $0x58] sm:$0xff] }
 0x1a3   : > { %361 = vst.msk [vmem:[#allocation3 + $0x38] sm:$0xff] %vm323_vm6, %v357_v29  ;;  %498 = vmatpush1.msra.mxu0 %v465_v30  ;;  %758 = vmatpush1.msra.mxu1 %v465_v30  ;;  %v621_v30 = vld [vmem:[%s992_s24 + $0x18] sm:$0xff] }
 0x1a4   : > { %499 = vmatprep.subr.mxu0 %v837_v2  ;;  %737 = vmatprep.subr.mxu1 %v837_v2 }
 0x1a5   : > { %500 = vmatpush1.msra.mxu0 %v464_v31  ;;  %759 = vmatpush1.msra.mxu1 %v464_v31 }
 0x1a6   : > { %501 = vmatprep.subr.mxu0 %v837_v2  ;;  %738 = vmatprep.subr.mxu1 %v837_v2  ;;  %v345_v32 = vpop.permute.xlu1 %344  ;;  %v463_v33 = vld [vmem:[#allocation3 + $0x48] sm:$0xff] }
 0x1a7   : > { %349 = vst.msk [vmem:[#allocation3 + $0x28] sm:$0xff] %vm323_vm6, %v345_v32  ;;  %502 = vmatpush1.msra.mxu0 %v463_v33  ;;  %760 = vmatpush1.msra.mxu1 %v463_v33 }
 0x1a8   : > { %503 = vmatprep.subr.mxu0 %v837_v2  ;;  %739 = vmatprep.subr.mxu1 %v837_v2 }
 0x1a9   : > { %504 = vmatpush1.msra.mxu0 %v462_v34  ;;  %761 = vmatpush1.msra.mxu1 %v462_v34 }
 0x1aa   : > { %505 = vmatprep.subr.mxu0 %v837_v2  ;;  %740 = vmatprep.subr.mxu1 %v837_v2  ;;  %v343_v35 = vpop.permute.xlu1 %342  ;;  %v461_v36 = vld [vmem:[#allocation3 + $0x38] sm:$0xff] }
 0x1ab   : > { %348 = vst.msk [vmem:[#allocation3 + $0x20] sm:$0xff] %vm323_vm6, %v343_v35  ;;  %506 = vmatpush1.msra.mxu0 %v461_v36  ;;  %762 = vmatpush1.msra.mxu1 %v461_v36 }
 0x1ac   : > { %507 = vmatprep.subr.mxu0 %v837_v2  ;;  %741 = vmatprep.subr.mxu1 %v837_v2 }
 0x1ad   : > { %508 = vmatpush1.msra.mxu0 %v460_v37  ;;  %763 = vmatpush1.msra.mxu1 %v460_v37 }
 0x1ae   : > { %509 = vmatprep.subr.mxu0 %v837_v2  ;;  %742 = vmatprep.subr.mxu1 %v837_v2  ;;  %v331_v38 = vpop.permute.xlu1 %330  ;;  %v459_v39 = vld [vmem:[#allocation3 + $0x28] sm:$0xff] }
 0x1af   : > { %336 = vst.msk [vmem:[#allocation3 + $0x10] sm:$0xff] %vm323_vm6, %v331_v38  ;;  %510 = vmatpush1.msra.mxu0 %v459_v39  ;;  %764 = vmatpush1.msra.mxu1 %v459_v39 }
 0x1b0   : > { %511 = vmatprep.subr.mxu0 %v837_v2  ;;  %743 = vmatprep.subr.mxu1 %v837_v2 }
 0x1b2   : > { %v318_v40 = vpop.permute.xlu1 %317  ;;  %v458_v41 = vld [vmem:[#allocation3 + $0x20] sm:$0xff] }
 0x1b3   : > { %324 = vst.msk [vmem:[#allocation3] sm:$0xff] %vm323_vm6, %v318_v40  ;;  %512 = vmatpush1.msra.mxu0 %v458_v41  ;;  %765 = vmatpush1.msra.mxu1 %v458_v41 }
 0x1b4   : > { %513 = vmatprep.subr.mxu0 %v837_v2  ;;  %744 = vmatprep.subr.mxu1 %v837_v2 }
 0x1b5   : > { %514 = vmatpush1.msra.mxu0 %v457_v42  ;;  %766 = vmatpush1.msra.mxu1 %v457_v42 }
 0x1b6   : > { %515 = vmatprep.subr.mxu0 %v837_v2  ;;  %745 = vmatprep.subr.mxu1 %v837_v2  ;;  %v439_v43 = vpop.permute.xlu1 %438  ;;  %v456_v44 = vld [vmem:[#allocation3 + $0x10] sm:$0xff] }
 0x1b7   : > { %444 = vst.msk [vmem:[#allocation3 + $0xa0] sm:$0xff] %vm323_vm6, %v439_v43  ;;  %516 = vmatpush1.msra.mxu0 %v456_v44  ;;  %767 = vmatpush1.msra.mxu1 %v456_v44 }
 0x1b8   : > { %517 = vmatprep.subr.mxu0 %v837_v2  ;;  %746 = vmatprep.subr.mxu1 %v837_v2 }
 0x1b9   : > { %518 = vmatpush1.msra.mxu0 %v455_v45  ;;  %768 = vmatpush1.msra.mxu1 %v455_v45 }
 0x1ba   : > { %519 = vmatprep.subr.mxu0 %v837_v2  ;;  %747 = vmatprep.subr.mxu1 %v837_v2  ;;  %v427_v46 = vpop.permute.xlu1 %426  ;;  %v454_v47 = vld [vmem:[#allocation3] sm:$0xff] }
 0x1bb   : > { %432 = vst.msk [vmem:[#allocation3 + $0x90] sm:$0xff] %vm323_vm6, %v427_v46  ;;  %520 = vmatpush1.msra.mxu0 %v454_v47  ;;  %769 = vmatpush1.msra.mxu1 %v454_v47 }
 0x1bc   : > { %541 = vmatprep.subr.mxu0 %v837_v2  ;;  %748 = vmatprep.subr.mxu1 %v837_v2 }
 0x1bd   : > { %542 = vmatpush2.msra.mxu0 %v475_v48  ;;  %770 = vmatpush2.msra.mxu1 %v475_v48 }
 0x1be   : > { %543 = vmatprep.subr.mxu0 %v837_v2  ;;  %749 = vmatprep.subr.mxu1 %v837_v2  ;;  %v415_v49 = vpop.permute.xlu1 %414  ;;  %v474_v50 = vld [vmem:[#allocation3 + $0xa0] sm:$0xff] }
 0x1bf   : > { %420 = vst.msk [vmem:[#allocation3 + $0x80] sm:$0xff] %vm323_vm6, %v415_v49  ;;  %544 = vmatpush2.msra.mxu0 %v474_v50  ;;  %771 = vmatpush2.msra.mxu1 %v474_v50 }
 0x1c0   : > { %545 = vmatprep.subr.mxu0 %v837_v2  ;;  %750 = vmatprep.subr.mxu1 %v837_v2 }
 0x1c1   : > { %546 = vmatpush2.msra.mxu0 %v473_v51  ;;  %772 = vmatpush2.msra.mxu1 %v473_v51 }
 0x1c2   : > { %547 = vmatprep.subr.mxu0 %v837_v2  ;;  %751 = vmatprep.subr.mxu1 %v837_v2  ;;  %v472_v52 = vld [vmem:[#allocation3 + $0x90] sm:$0xff] }
 0x1c3   : > { %548 = vmatpush2.msra.mxu0 %v472_v52  ;;  %773 = vmatpush2.msra.mxu1 %v472_v52 }
 0x1c4   : > { %549 = vmatprep.subr.mxu0 %v837_v2  ;;  %752 = vmatprep.subr.mxu1 %v837_v2 }
 0x1c5   : > { %550 = vmatpush2.msra.mxu0 %v471_v53  ;;  %774 = vmatpush2.msra.mxu1 %v471_v53 }
 0x1c6   : > { %551 = vmatprep.subr.mxu0 %v837_v2  ;;  %753 = vmatprep.subr.mxu1 %v837_v2  ;;  %v470_v56 = vld [vmem:[#allocation3 + $0x80] sm:$0xff] }
 0x1c7   : > { %552 = vmatpush2.msra.mxu0 %v470_v56  ;;  %775 = vmatpush2.msra.mxu1 %v470_v56 }
 0x1c8   : > { %554 = vmatmul.mubr.f32.vlgmr.msra.gmra.mxu0 %v446_v54  ;;  %564 = vmatmul.mubr.f32.vlgmr.msra.gmra.mxu1 %v450_v55 }
 0x1c9   : > { %725 = vmatprep.mubr.msk.f32.mxu0 %vm476_vm5, %v449_v57  ;;  %727 = vmatprep.mubr.msk.f32.mxu1 %vm476_vm5, %v453_v58 }
 0x1cc   : > { %559 = vmatmul.mubr.f32.gmra.mxu0 %v448_v59  ;;  %569 = vmatmul.mubr.f32.gmra.mxu1 %v452_v60 }
 0x288   : > { %v555_v61 = vpop.f32.mrf.mxu0  ;;  %v565_v62 = vpop.f32.mrf.mxu1 }
 0x289   : > { %574 = vst.msk [vmem:[#allocation4] sm:$0xff] %vm323_vm6, %v555_v61  ;;  %576 = vst.msk [vmem:[#allocation4 + $0x10] sm:$0xff] %vm323_vm6, %v565_v62 }
 0x28a   : > { %v557_v63 = vpop.f32.mrf.mxu0  ;;  %v567_v0 = vpop.f32.mrf.mxu1 }
 0x28c   : > { %v560_v1 = vpop.f32.mrf.mxu0  ;;  %v570_v3 = vpop.f32.mrf.mxu1 }
 0x28d   : > { %575 = vst.msk [vmem:[#allocation4 + $0x8] sm:$0xff] %vm323_vm6, %v560_v1  ;;  %577 = vst.msk [vmem:[#allocation4 + $0x18] sm:$0xff] %vm323_vm6, %v570_v3 }
 0x28e   : > { %v562_v4 = vpop.f32.mrf.mxu0  ;;  %v572_v5 = vpop.f32.mrf.mxu1 }
 0x290   : > { %v578_v6 = vld [vmem:[#allocation4] sm:$0xff]  ;;  %v580_v7 = vld [vmem:[#allocation4 + $0x10] sm:$0xff] }
 0x291   : > { %v582_v2 = vsel %vm323_vm6, %v578_v6, 0.0  ;;  %v588_v8 = vsel %vm323_vm6, %v580_v7, 0.0  ;;  %v598_v15 = vmul.f32 %v578_v6, %v578_v6  ;;  %v600_v19 = vmul.f32 %v580_v7, %v580_v7 }
 0x292   : > { %583 = vadd.xlane.f32.xlu0 %v582_v2 }
 0x293   : > { %v602_v17 = vsel %vm323_vm6, %v598_v15, 0.0  ;;  %v608_v20 = vsel %vm323_vm6, %v600_v19, 0.0 }
 0x294   : > { %v579_v9 = vld [vmem:[#allocation4 + $0x8] sm:$0xff]  ;;  %v581_v10 = vld [vmem:[#allocation4 + $0x18] sm:$0xff] }
 0x295   : > { %v585_v11 = vsel %vm323_vm6, %v579_v9, 0.0  ;;  %v599_v12 = vmul.f32 %v579_v9, %v579_v9  ;;  %v591_v13 = vsel %vm323_vm6, %v581_v10, 0.0  ;;  %v601_v16 = vmul.f32 %v581_v10, %v581_v10 }
 0x296   : > { %589 = vadd.xlane.f32.xlu0 %v588_v8  ;;  %586 = vadd.xlane.f32.xlu1 %v585_v11 }
 0x297   : > { %v605_v14 = vsel %vm323_vm6, %v599_v12, 0.0  ;;  %v611_v18 = vsel %vm323_vm6, %v601_v16, 0.0 }
 0x29a   : > { %592 = vadd.xlane.f32.xlu0 %v591_v13  ;;  %606 = vadd.xlane.f32.xlu1 %v605_v14 }
 0x29e   : > { %603 = vadd.xlane.f32.xlu0 %v602_v17  ;;  %612 = vadd.xlane.f32.xlu1 %v611_v18 }
 0x2a2   : > { %609 = vadd.xlane.f32.xlu0 %v608_v20 }
 0x31b   : > { %v584_v22 = vpop.xlane.xlu0 %583 }
 0x31c   : > { %v622_v23 = vadd.f32 %v618_v21, %v584_v22 }
 0x31e   : > { %627 = vst.msk [vmem:[%s992_s24] sm:$0xff] %vm626_vm8, %v622_v23 }
 0x31f   : > { %v590_v26 = vpop.xlane.xlu0 %589  ;;  %v587_v27 = vpop.xlane.xlu1 %586 }
 0x320   : > { %v624_v28 = vadd.f32 %v620_v24, %v590_v26  ;;  %v623_v29 = vadd.f32 %v619_v25, %v587_v27 }
 0x322   : > { %629 = vst.msk [vmem:[%s992_s24 + $0x10] sm:$0xff] %vm626_vm8, %v624_v28  ;;  %628 = vst.msk [vmem:[%s992_s24 + $0x8] sm:$0xff] %vm626_vm8, %v623_v29 }
 0x323   : > { %v593_v31 = vpop.xlane.xlu0 %592  ;;  %v607_v33 = vpop.xlane.xlu1 %606 }
 0x324   : > { %v625_v32 = vadd.f32 %v621_v30, %v593_v31 }
 0x325   : > { %v631_v34 = vld [vmem:[%s992_s24] sm:$0xff] }
 0x326   : > { %630 = vst.msk [vmem:[%s992_s24 + $0x18] sm:$0xff] %vm626_vm8, %v625_v32 }
 0x327   : > { %v604_v35 = vpop.xlane.xlu0 %603  ;;  %v613_v43 = vpop.xlane.xlu1 %612 }
 0x328   : > { %v635_v36 = vadd.f32 %v631_v34, %v604_v35 }
 0x329   : > { %v632_v37 = vld [vmem:[%s992_s24 + $0x8] sm:$0xff]  ;;  %v633_v39 = vld [vmem:[%s992_s24 + $0x10] sm:$0xff] }
 0x32a   : > { %v636_v38 = vadd.f32 %v632_v37, %v607_v33  ;;  %640 = vst.msk [vmem:[%s992_s24] sm:$0xff] %vm639_vm9, %v635_v36 }
 0x32b   : > { %v610_v40 = vpop.xlane.xlu0 %609 }
 0x32c   : > { %641 = vst.msk [vmem:[%s992_s24 + $0x8] sm:$0xff] %vm639_vm9, %v636_v38  ;;  %v637_v41 = vadd.f32 %v633_v39, %v610_v40 }
 0x32d   : > { %v634_v42 = vld [vmem:[%s992_s24 + $0x18] sm:$0xff] }
 0x32e   : > { %v638_v44 = vadd.f32 %v634_v42, %v613_v43  ;;  %642 = vst.msk [vmem:[%s992_s24 + $0x10] sm:$0xff] %vm639_vm9, %v637_v41 }
 0x330   : > { %643 = vst.msk [vmem:[%s992_s24 + $0x18] sm:$0xff] %vm639_vm9, %v638_v44 }
 0x331 PF: > { %s12_s11 = sadd.s32 1, %s835_s11   ;;  %s1046_s9 = smov %s831_s10 }
 0x332   : > { %p9_p5 = scmp.ge.s32.totalorder %s12_s11, 4   ;;  %s1047_s10 = smov %s1049_s12 }
 0x334   :  { %11 = sbr.rel (!%p9_p5) target bundleno = 2 (0x2), region = 73 }

// kernel: conv_embedding.3
= control target key start
LH: loop header
LB: loop body
LE: loop exit
PB: predicated region body
PF: predicated region fallthrough
CT: control target
= control target key end

     0   :  { %s948_s15 = smov 0   ;;  %s950_s16 = smov 0   ;;  %s1116_s0 = inlined_call_operand.vmem [shape: f32[2,16,12], index: 0, kind: input, shape index: {}]   ;;  %s1117_s1 = inlined_call_operand.vmem [shape: f32[32,176], index: 1, kind: input, shape index: {}]   ;;  %s1118_s2 = inlined_call_operand.vmem [shape: f32[32,1], index: 2, kind: input, shape index: {}]   ;;  %s1119_s3 = inlined_call_operand.vmem [shape: f32[32,1], index: 3, kind: input, shape index: {}]   ;;  %s1120_s4 = inlined_call_operand.vmem [shape: f32[2,32,16], index: 4, kind: output, shape index: {}]  }
   0x1   :  { %s952_s17 = smov 0  }
   0x2 LB: > { %s26_s18 = sadd.s32 1, %s903_s16  ;;  %p786_p0 = scmp.ge.s32.totalorder %s907_s17, 1  ;;  %s907_s17 = sphi %s952_s17, %s14_s17   ;;  %s903_s16 = sphi %s950_s16, %s1122_s16   ;;  %s899_s15 = sphi %s948_s15, %s1121_s15  }
   0x3   : > { %p28_p1 = scmp.ge.s32.totalorder %s26_s18, 2  ;;  %p176_p2 = scmp.lt.s32.totalorder %s907_s17, 3 }
   0x5   : > { %s1124_s18 = smov (%p28_p1, %s26_s18), 0  ;;  %p177_p3 = pnand %p786_p0, %p176_p2 }
   0x6   : > { %p205_p4 = scmp.lt.s32.totalorder (!%p177_p3), %s899_s15, 1  ;;  %s910_s23 = smov (!%p177_p3), 8  }
   0x7   : > { %180 = sbr.rel (%p177_p3) target bundleno = 668 (0x29c), region = 36  ;;  %s911_s24 = smov (!%p177_p3), 118  }
   0x8   : > { %s912_s25 = smov (!%p177_p3), 124   ;;  %s913_s26 = smov (!%p177_p3), 125  }
   0x9   : > { %s914_s27 = smov (!%p177_p3), 119   ;;  %s915_s28 = smov (!%p177_p3), 115  }
   0xa   : > { %s916_s29 = smov (!%p177_p3), 120   ;;  %s917_s30 = smov (!%p177_p3), 116  }
   0xb   : > { %s918_s5 = smov (!%p177_p3), 121   ;;  %s919_s6 = smov (!%p177_p3), 117  }
   0xc   : > { %s1126_s15 = smov (!%p205_p4, %s899_s15), 1  ;;  %vm219_vm0 = vcmask 64512   ;;  %vm222_vm1 = vcmask 261312   ;;  %vm225_vm2 = vcmask 257024   ;;  %v909_v2 = vmov 0.0   ;;  %s920_s7 = smov 122  }
   0xd   : > { %s799_s19 = sshll.u32 %s1126_s15, 4  ;;  %221 = vst.msk [vmem:[#allocation2 + $0x8] sm:$0xff] %vm219_vm0, %v909_v2  ;;  %220 = vst.msk [vmem:[#allocation2] sm:$0xff] %vm219_vm0, %v909_v2  ;;  %542 = vmatprep.subr.mxu0 %v909_v2  ;;  %801 = vmatprep.subr.mxu1 %v909_v2  ;;  %vm272_vm3 = vcmask 191552   ;;  %vm270_vm4 = vcmask 195648   ;;  %s921_s8 = smov 123  }
   0xe   : > { %s209_s22 = scalar_lea.vmem %s1116_s0, %s799_s19  ;;  %224 = vst.msk [vmem:[#allocation2 + $0x8] sm:$0xff] %vm222_vm1, %v909_v2  ;;  %223 = vst.msk [vmem:[#allocation2] sm:$0xff] %vm222_vm1, %v909_v2  ;;  %v500_v9 = vld [vmem:[%s1117_s1 + $0x8] sm:$0xff]  ;;  %vm529_vm5 = vcmask 392192   ;;  %v631_v11 = vld [vmem:[%s1118_s2] sm:$0xff]  ;;  %v922_v12 = vmov 0  }
   0xf   : > { %v228_v0 = vld [vmem:[%s209_s22] sm:$0xff]  ;;  %v229_v1 = vld [vmem:[%s209_s22 + $0x8] sm:$0xff]  ;;  %226 = vst.msk [vmem:[#allocation2 + $0xc] sm:$0xf] %vm225_vm2, %v909_v2  ;;  %793 = vmatprep.mubr.msk.f32.mxu0 %vm529_vm5, %v500_v9  ;;  %884 = vset.pattern.permute.xlu1 %v922_v12  ;;  %v634_v14 = vld [vmem:[%s1118_s2 + $0x18] sm:$0xff]  ;;  %vm376_vm6 = vcmask 130048  }
  0x10   : > { %230 = vxpose.xlu0.b32.start [1/2] (short) (narrow) %v228_v0, 16  ;;  %v504_v10 = vld [vmem:[%s1117_s1 + $0x28] sm:$0xff]  ;;  %v633_v15 = vld [vmem:[%s1118_s2 + $0x10] sm:$0xff]  ;;  %v635_v17 = vld [vmem:[%s1119_s3] sm:$0xff] }
  0x11   : > { %795 = vmatprep.mubr.msk.f32.mxu1 %vm529_vm5, %v504_v10  ;;  %v632_v13 = vld [vmem:[%s1118_s2 + $0x8] sm:$0xff]  ;;  %v638_v18 = vld [vmem:[%s1119_s3 + $0x18] sm:$0xff]  ;;  %v637_v19 = vld [vmem:[%s1119_s3 + $0x10] sm:$0xff] }
  0x12   : > { %v636_v16 = vld [vmem:[%s1119_s3 + $0x8] sm:$0xff]  ;;  %v499_v63 = vld [vmem:[%s1117_s1] sm:$0xff] }
  0x13   : > { %v503_v0 = vld [vmem:[%s1117_s1 + $0x20] sm:$0xff] }
  0x14   : > { %231 = vxpose.xlu0.b32.end [2/2] (short) (narrow) %v229_v1, 16 }
  0x3d   : > { %883 = vset.pattern.permute.xlu0 %v922_v12 }
  0x8c   : > { %v246_v3 = vpop.trf.xlu0 }
  0x90   : > { %v247_v4 = vpop.trf.xlu0 }
  0x91   : > { %266 = vrot.lane.b32.xlu1 %v247_v4, %s910_s23  ;;  %v506_v4 = vld [vmem:[%s1117_s1 + $0x38] sm:$0xff] }
  0x95   : > { %264 = vrot.lane.b32.xlu1 %v246_v3, %s910_s23  ;;  %v502_v3 = vld [vmem:[%s1117_s1 + $0x18] sm:$0xff]  ;;  %s800_s23 = sshll.u32 %s1126_s15, 5 }
 0x103   : > { %v267_v5 = vpop.permute.xlu1 %266 }
 0x104   : > { %273 = vst.msk [vmem:[#allocation2 + $0x8] sm:$0xf] %vm272_vm3, %v267_v5  ;;  %v505_v5 = vld [vmem:[%s1117_s1 + $0x30] sm:$0xff] }
 0x107   : > { %v265_v6 = vpop.permute.xlu1 %264 }
 0x108   : > { %271 = vst.msk [vmem:[#allocation2] sm:$0xff] %vm270_vm4, %v265_v6 }
 0x10b   : > { %v452_v7 = vld [vmem:[#allocation2 + $0x8] sm:$0xff] }
 0x10c   : > { %457 = vrot.lane.b32.xlu0 %v452_v7, %s911_s24 }
 0x10f   : > { %v451_v8 = vld [vmem:[#allocation2] sm:$0xff] }
 0x110   : > { %385 = vrot.lane.b32.xlu0 %v452_v7, %s912_s25  ;;  %455 = vrot.lane.b32.xlu1 %v451_v8, %s911_s24 }
 0x114   : > { %372 = vrot.lane.b32.xlu0 %v452_v7, %s913_s26  ;;  %443 = vrot.lane.b32.xlu1 %v451_v8, %s914_s27 }
 0x118   : > { %493 = vrot.lane.b32.xlu0 %v452_v7, %s915_s28  ;;  %431 = vrot.lane.b32.xlu1 %v451_v8, %s916_s29 }
 0x11c   : > { %481 = vrot.lane.b32.xlu0 %v452_v7, %s917_s30  ;;  %419 = vrot.lane.b32.xlu1 %v451_v8, %s918_s5 }
 0x120   : > { %469 = vrot.lane.b32.xlu0 %v452_v7, %s919_s6  ;;  %407 = vrot.lane.b32.xlu1 %v451_v8, %s920_s7 }
 0x124   : > { %445 = vrot.lane.b32.xlu1 %v452_v7, %s914_s27  ;;  %645 = vperm.xlu0 %883, %v631_v11  }
 0x128   : > { %433 = vrot.lane.b32.xlu1 %v452_v7, %s916_s29  ;;  %660 = vperm.xlu0 %883, %v634_v14  }
 0x12c   : > { %421 = vrot.lane.b32.xlu1 %v452_v7, %s918_s5  ;;  %674 = vperm.xlu0 %883, %v636_v16  }
 0x130   : > { %409 = vrot.lane.b32.xlu1 %v452_v7, %s920_s7  ;;  %684 = vperm.xlu0 %883, %v638_v18  }
 0x134   : > { %397 = vrot.lane.b32.xlu1 %v452_v7, %s921_s8 }
 0x138   : > { %395 = vrot.lane.b32.xlu1 %v451_v8, %s921_s8 }
 0x13c   : > { %383 = vrot.lane.b32.xlu1 %v451_v8, %s912_s25 }
 0x140   : > { %370 = vrot.lane.b32.xlu1 %v451_v8, %s913_s26  ;;  %s217_s26 = scalar_lea.vmem %s1120_s4, %s800_s23 }
 0x144   : > { %491 = vrot.lane.b32.xlu1 %v451_v8, %s915_s28 }
 0x148   : > { %479 = vrot.lane.b32.xlu1 %v451_v8, %s917_s30 }
 0x14c   : > { %467 = vrot.lane.b32.xlu1 %v451_v8, %s919_s6 }
 0x150   : > { %650 = vperm.xlu1 %884, %v632_v13  }
 0x154   : > { %655 = vperm.xlu1 %884, %v633_v15  }
 0x158   : > { %669 = vperm.xlu1 %884, %v635_v17  }
 0x15c   : > { %679 = vperm.xlu1 %884, %v637_v19  }
 0x17e   : > { %v458_v20 = vpop.permute.xlu0 %457 }
 0x17f   : > { %462 = vst.msk [vmem:[#allocation3 + $0x78] sm:$0xff] %vm376_vm6, %v458_v20 }
 0x182   : > { %v386_v21 = vpop.permute.xlu0 %385  ;;  %v456_v22 = vpop.permute.xlu1 %455 }
 0x183   : > { %390 = vst.msk [vmem:[#allocation3 + $0x18] sm:$0xff] %vm376_vm6, %v386_v21  ;;  %461 = vst.msk [vmem:[#allocation3 + $0x70] sm:$0xff] %vm376_vm6, %v456_v22 }
 0x186   : > { %v373_v23 = vpop.permute.xlu0 %372  ;;  %v444_v24 = vpop.permute.xlu1 %443  ;;  %v522_v25 = vld [vmem:[#allocation3 + $0x78] sm:$0xff] }
 0x187   : > { %378 = vst.msk [vmem:[#allocation3 + $0x8] sm:$0xff] %vm376_vm6, %v373_v23  ;;  %449 = vst.msk [vmem:[#allocation3 + $0x60] sm:$0xff] %vm376_vm6, %v444_v24  ;;  %543 = vmatpush1.msra.mxu0 %v522_v25  ;;  %823 = vmatpush1.msra.mxu1 %v522_v25 }
 0x188   : > { %544 = vmatprep.subr.mxu0 %v909_v2  ;;  %802 = vmatprep.subr.mxu1 %v909_v2 }
 0x18a   : > { %v494_v26 = vpop.permute.xlu0 %493  ;;  %v432_v27 = vpop.permute.xlu1 %431  ;;  %v521_v28 = vld [vmem:[#allocation3 + $0x70] sm:$0xff]  ;;  %v510_v51 = vld [vmem:[#allocation3 + $0x18] sm:$0xff] }
 0x18b   : > { %498 = vst.msk [vmem:[#allocation3 + $0xa8] sm:$0xff] %vm376_vm6, %v494_v26  ;;  %437 = vst.msk [vmem:[#allocation3 + $0x50] sm:$0xff] %vm376_vm6, %v432_v27  ;;  %545 = vmatpush1.msra.mxu0 %v521_v28  ;;  %824 = vmatpush1.msra.mxu1 %v521_v28 }
 0x18c   : > { %546 = vmatprep.subr.mxu0 %v909_v2  ;;  %803 = vmatprep.subr.mxu1 %v909_v2 }
 0x18e   : > { %v482_v29 = vpop.permute.xlu0 %481  ;;  %v420_v30 = vpop.permute.xlu1 %419  ;;  %v519_v37 = vld [vmem:[#allocation3 + $0x60] sm:$0xff]  ;;  %v508_v54 = vld [vmem:[#allocation3 + $0x8] sm:$0xff] }
 0x18f   : > { %486 = vst.msk [vmem:[#allocation3 + $0x98] sm:$0xff] %vm376_vm6, %v482_v29  ;;  %425 = vst.msk [vmem:[#allocation3 + $0x40] sm:$0xff] %vm376_vm6, %v420_v30 }
 0x192   : > { %v470_v31 = vpop.permute.xlu0 %469  ;;  %v408_v32 = vpop.permute.xlu1 %407  ;;  %v517_v40 = vld [vmem:[#allocation3 + $0x50] sm:$0xff]  ;;  %v528_v57 = vld [vmem:[#allocation3 + $0xa8] sm:$0xff] }
 0x193   : > { %474 = vst.msk [vmem:[#allocation3 + $0x88] sm:$0xff] %vm376_vm6, %v470_v31  ;;  %413 = vst.msk [vmem:[#allocation3 + $0x30] sm:$0xff] %vm376_vm6, %v408_v32 }
 0x196   : > { %v446_v33 = vpop.permute.xlu1 %445  ;;  %v515_v43 = vld [vmem:[#allocation3 + $0x40] sm:$0xff]  ;;  %v526_v60 = vld [vmem:[#allocation3 + $0x98] sm:$0xff] }
 0x197   : > { %450 = vst.msk [vmem:[#allocation3 + $0x68] sm:$0xff] %vm376_vm6, %v446_v33 }
 0x19a   : > { %v434_v34 = vpop.permute.xlu1 %433  ;;  %v513_v46 = vld [vmem:[#allocation3 + $0x30] sm:$0xff]  ;;  %v524_v62 = vld [vmem:[#allocation3 + $0x88] sm:$0xff] }
 0x19b   : > { %438 = vst.msk [vmem:[#allocation3 + $0x58] sm:$0xff] %vm376_vm6, %v434_v34 }
 0x19e   : > { %v422_v35 = vpop.permute.xlu1 %421  ;;  %v520_v36 = vld [vmem:[#allocation3 + $0x68] sm:$0xff] }
 0x19f   : > { %426 = vst.msk [vmem:[#allocation3 + $0x48] sm:$0xff] %vm376_vm6, %v422_v35  ;;  %547 = vmatpush1.msra.mxu0 %v520_v36  ;;  %825 = vmatpush1.msra.mxu1 %v520_v36  ;;  %v646_v7 = vpop.permute.xlu0 %645 }
 0x1a0   : > { %548 = vmatprep.subr.mxu0 %v909_v2  ;;  %804 = vmatprep.subr.mxu1 %v909_v2 }
 0x1a1   : > { %549 = vmatpush1.msra.mxu0 %v519_v37  ;;  %826 = vmatpush1.msra.mxu1 %v519_v37 }
 0x1a2   : > { %550 = vmatprep.subr.mxu0 %v909_v2  ;;  %805 = vmatprep.subr.mxu1 %v909_v2  ;;  %v410_v38 = vpop.permute.xlu1 %409  ;;  %v518_v39 = vld [vmem:[#allocation3 + $0x58] sm:$0xff] }
 0x1a3   : > { %414 = vst.msk [vmem:[#allocation3 + $0x38] sm:$0xff] %vm376_vm6, %v410_v38  ;;  %551 = vmatpush1.msra.mxu0 %v518_v39  ;;  %827 = vmatpush1.msra.mxu1 %v518_v39  ;;  %v661_v11 = vpop.permute.xlu0 %660 }
 0x1a4   : > { %552 = vmatprep.subr.mxu0 %v909_v2  ;;  %806 = vmatprep.subr.mxu1 %v909_v2 }
 0x1a5   : > { %553 = vmatpush1.msra.mxu0 %v517_v40  ;;  %828 = vmatpush1.msra.mxu1 %v517_v40 }
 0x1a6   : > { %554 = vmatprep.subr.mxu0 %v909_v2  ;;  %807 = vmatprep.subr.mxu1 %v909_v2  ;;  %v398_v41 = vpop.permute.xlu1 %397  ;;  %v516_v42 = vld [vmem:[#allocation3 + $0x48] sm:$0xff] }
 0x1a7   : > { %402 = vst.msk [vmem:[#allocation3 + $0x28] sm:$0xff] %vm376_vm6, %v398_v41  ;;  %555 = vmatpush1.msra.mxu0 %v516_v42  ;;  %829 = vmatpush1.msra.mxu1 %v516_v42  ;;  %v675_v19 = vpop.permute.xlu0 %674 }
 0x1a8   : > { %556 = vmatprep.subr.mxu0 %v909_v2  ;;  %808 = vmatprep.subr.mxu1 %v909_v2 }
 0x1a9   : > { %557 = vmatpush1.msra.mxu0 %v515_v43  ;;  %830 = vmatpush1.msra.mxu1 %v515_v43 }
 0x1aa   : > { %558 = vmatprep.subr.mxu0 %v909_v2  ;;  %809 = vmatprep.subr.mxu1 %v909_v2  ;;  %v396_v44 = vpop.permute.xlu1 %395  ;;  %v514_v45 = vld [vmem:[#allocation3 + $0x38] sm:$0xff] }
 0x1ab   : > { %401 = vst.msk [vmem:[#allocation3 + $0x20] sm:$0xff] %vm376_vm6, %v396_v44  ;;  %559 = vmatpush1.msra.mxu0 %v514_v45  ;;  %831 = vmatpush1.msra.mxu1 %v514_v45  ;;  %v685_v33 = vpop.permute.xlu0 %684 }
 0x1ac   : > { %560 = vmatprep.subr.mxu0 %v909_v2  ;;  %810 = vmatprep.subr.mxu1 %v909_v2 }
 0x1ad   : > { %561 = vmatpush1.msra.mxu0 %v513_v46  ;;  %832 = vmatpush1.msra.mxu1 %v513_v46 }
 0x1ae   : > { %562 = vmatprep.subr.mxu0 %v909_v2  ;;  %811 = vmatprep.subr.mxu1 %v909_v2  ;;  %v384_v47 = vpop.permute.xlu1 %383  ;;  %v512_v48 = vld [vmem:[#allocation3 + $0x28] sm:$0xff] }
 0x1af   : > { %389 = vst.msk [vmem:[#allocation3 + $0x10] sm:$0xff] %vm376_vm6, %v384_v47  ;;  %563 = vmatpush1.msra.mxu0 %v512_v48  ;;  %833 = vmatpush1.msra.mxu1 %v512_v48 }
 0x1b0   : > { %564 = vmatprep.subr.mxu0 %v909_v2  ;;  %812 = vmatprep.subr.mxu1 %v909_v2 }
 0x1b2   : > { %v371_v49 = vpop.permute.xlu1 %370  ;;  %v511_v50 = vld [vmem:[#allocation3 + $0x20] sm:$0xff] }
 0x1b3   : > { %377 = vst.msk [vmem:[#allocation3] sm:$0xff] %vm376_vm6, %v371_v49  ;;  %565 = vmatpush1.msra.mxu0 %v511_v50  ;;  %834 = vmatpush1.msra.mxu1 %v511_v50 }
 0x1b4   : > { %566 = vmatprep.subr.mxu0 %v909_v2  ;;  %813 = vmatprep.subr.mxu1 %v909_v2 }
 0x1b5   : > { %567 = vmatpush1.msra.mxu0 %v510_v51  ;;  %835 = vmatpush1.msra.mxu1 %v510_v51 }
 0x1b6   : > { %568 = vmatprep.subr.mxu0 %v909_v2  ;;  %814 = vmatprep.subr.mxu1 %v909_v2  ;;  %v492_v52 = vpop.permute.xlu1 %491  ;;  %v509_v53 = vld [vmem:[#allocation3 + $0x10] sm:$0xff] }
 0x1b7   : > { %497 = vst.msk [vmem:[#allocation3 + $0xa0] sm:$0xff] %vm376_vm6, %v492_v52  ;;  %569 = vmatpush1.msra.mxu0 %v509_v53  ;;  %836 = vmatpush1.msra.mxu1 %v509_v53 }
 0x1b8   : > { %570 = vmatprep.subr.mxu0 %v909_v2  ;;  %815 = vmatprep.subr.mxu1 %v909_v2 }
 0x1b9   : > { %571 = vmatpush1.msra.mxu0 %v508_v54  ;;  %837 = vmatpush1.msra.mxu1 %v508_v54 }
 0x1ba   : > { %572 = vmatprep.subr.mxu0 %v909_v2  ;;  %816 = vmatprep.subr.mxu1 %v909_v2  ;;  %v480_v55 = vpop.permute.xlu1 %479  ;;  %v507_v56 = vld [vmem:[#allocation3] sm:$0xff] }
 0x1bb   : > { %485 = vst.msk [vmem:[#allocation3 + $0x90] sm:$0xff] %vm376_vm6, %v480_v55  ;;  %573 = vmatpush1.msra.mxu0 %v507_v56  ;;  %838 = vmatpush1.msra.mxu1 %v507_v56 }
 0x1bc   : > { %594 = vmatprep.subr.mxu0 %v909_v2  ;;  %817 = vmatprep.subr.mxu1 %v909_v2 }
 0x1bd   : > { %595 = vmatpush2.msra.mxu0 %v528_v57  ;;  %839 = vmatpush2.msra.mxu1 %v528_v57 }
 0x1be   : > { %596 = vmatprep.subr.mxu0 %v909_v2  ;;  %818 = vmatprep.subr.mxu1 %v909_v2  ;;  %v468_v58 = vpop.permute.xlu1 %467  ;;  %v527_v59 = vld [vmem:[#allocation3 + $0xa0] sm:$0xff] }
 0x1bf   : > { %473 = vst.msk [vmem:[#allocation3 + $0x80] sm:$0xff] %vm376_vm6, %v468_v58  ;;  %597 = vmatpush2.msra.mxu0 %v527_v59  ;;  %840 = vmatpush2.msra.mxu1 %v527_v59 }
 0x1c0   : > { %598 = vmatprep.subr.mxu0 %v909_v2  ;;  %819 = vmatprep.subr.mxu1 %v909_v2 }
 0x1c1   : > { %599 = vmatpush2.msra.mxu0 %v526_v60  ;;  %841 = vmatpush2.msra.mxu1 %v526_v60 }
 0x1c2   : > { %600 = vmatprep.subr.mxu0 %v909_v2  ;;  %820 = vmatprep.subr.mxu1 %v909_v2  ;;  %v525_v61 = vld [vmem:[#allocation3 + $0x90] sm:$0xff] }
 0x1c3   : > { %601 = vmatpush2.msra.mxu0 %v525_v61  ;;  %842 = vmatpush2.msra.mxu1 %v525_v61 }
 0x1c4   : > { %602 = vmatprep.subr.mxu0 %v909_v2  ;;  %821 = vmatprep.subr.mxu1 %v909_v2 }
 0x1c5   : > { %603 = vmatpush2.msra.mxu0 %v524_v62  ;;  %843 = vmatpush2.msra.mxu1 %v524_v62 }
 0x1c6   : > { %604 = vmatprep.subr.mxu0 %v909_v2  ;;  %822 = vmatprep.subr.mxu1 %v909_v2  ;;  %v523_v1 = vld [vmem:[#allocation3 + $0x80] sm:$0xff] }
 0x1c7   : > { %605 = vmatpush2.msra.mxu0 %v523_v1  ;;  %844 = vmatpush2.msra.mxu1 %v523_v1  ;;  %v501_v2 = vld [vmem:[%s1117_s1 + $0x10] sm:$0xff] }
 0x1c8   : > { %607 = vmatmul.mubr.f32.vlgmr.msra.gmra.mxu0 %v499_v63  ;;  %617 = vmatmul.mubr.f32.vlgmr.msra.gmra.mxu1 %v503_v0 }
 0x1c9   : > { %794 = vmatprep.mubr.msk.f32.mxu0 %vm529_vm5, %v502_v3  ;;  %796 = vmatprep.mubr.msk.f32.mxu1 %vm529_vm5, %v506_v4 }
 0x1cb   : > { %v651_v6 = vpop.permute.xlu1 %650 }
 0x1cc   : > { %612 = vmatmul.mubr.f32.gmra.mxu0 %v501_v2  ;;  %622 = vmatmul.mubr.f32.gmra.mxu1 %v505_v5 }
 0x1cf   : > { %v656_v8 = vpop.permute.xlu1 %655 }
 0x1d3   : > { %v670_v14 = vpop.permute.xlu1 %669 }
 0x1d7   : > { %v680_v24 = vpop.permute.xlu1 %679 }
 0x288   : > { %v608_v9 = vpop.f32.mrf.mxu0  ;;  %v618_v10 = vpop.f32.mrf.mxu1 }
 0x289   : > { %627 = vst.msk [vmem:[#allocation4] sm:$0xff] %vm376_vm6, %v608_v9  ;;  %629 = vst.msk [vmem:[#allocation4 + $0x10] sm:$0xff] %vm376_vm6, %v618_v10 }
 0x28a   : > { %v610_v12 = vpop.f32.mrf.mxu0  ;;  %v620_v13 = vpop.f32.mrf.mxu1 }
 0x28c   : > { %v613_v15 = vpop.f32.mrf.mxu0  ;;  %v623_v16 = vpop.f32.mrf.mxu1 }
 0x28d   : > { %628 = vst.msk [vmem:[#allocation4 + $0x8] sm:$0xff] %vm376_vm6, %v613_v15  ;;  %630 = vst.msk [vmem:[#allocation4 + $0x18] sm:$0xff] %vm376_vm6, %v623_v16 }
 0x28e   : > { %v615_v17 = vpop.f32.mrf.mxu0  ;;  %v625_v18 = vpop.f32.mrf.mxu1 }
 0x290   : > { %v639_v20 = vld [vmem:[#allocation4] sm:$0xff]  ;;  %v641_v21 = vld [vmem:[#allocation4 + $0x10] sm:$0xff] }
 0x291   : > { %v663_v22 = vmul.f32 %v646_v7, %v639_v20  ;;  %v665_v23 = vmul.f32 %v656_v8, %v641_v21 }
 0x293   : > { %v687_v25 = vadd.f32 %v670_v14, %v663_v22  ;;  %v689_v26 = vadd.f32 %v680_v24, %v665_v23 }
 0x294   : > { %v640_v27 = vld [vmem:[#allocation4 + $0x8] sm:$0xff]  ;;  %v642_v28 = vld [vmem:[#allocation4 + $0x18] sm:$0xff] }
 0x295   : > { %v691_v29 = vmax.f32 %v687_v25, 0.0  ;;  %v693_v30 = vmax.f32 %v689_v26, 0.0  ;;  %v664_v31 = vmul.f32 %v651_v6, %v640_v27  ;;  %v666_v32 = vmul.f32 %v661_v11, %v642_v28 }
 0x297   : > { %695 = vst.msk [vmem:[%s217_s26] sm:$0xff] %vm376_vm6, %v691_v29  ;;  %697 = vst.msk [vmem:[%s217_s26 + $0x10] sm:$0xff] %vm376_vm6, %v693_v30  ;;  %v688_v34 = vadd.f32 %v675_v19, %v664_v31  ;;  %v690_v35 = vadd.f32 %v685_v33, %v666_v32 }
 0x299   : > { %v692_v36 = vmax.f32 %v688_v34, 0.0  ;;  %v694_v37 = vmax.f32 %v690_v35, 0.0 }
 0x29b   : > { %696 = vst.msk [vmem:[%s217_s26 + $0x8] sm:$0xff] %vm376_vm6, %v692_v36  ;;  %698 = vst.msk [vmem:[%s217_s26 + $0x18] sm:$0xff] %vm376_vm6, %v694_v37 }
 0x29c PF: > { %s14_s17 = sadd.s32 1, %s907_s17   ;;  %s1121_s15 = smov %s903_s16 }
 0x29d   : > { %p11_p5 = scmp.ge.s32.totalorder %s14_s17, 4   ;;  %s1122_s16 = smov %s1124_s18 }
 0x29f   :  { %13 = sbr.rel (!%p11_p5) target bundleno = 2 (0x2), region = 77 }

</bundles_post_ra>
